<compile_context>
chip_gen: v5e
topology: v5e:2x2
jax: 0.10.0
libtpu: 0.0.40
codegen_flags: <defaults>
</compile_context>

<pallas_src>
import functools

import jax
import jax.numpy as jnp
from jax.experimental import pallas as pl
from jax.experimental.pallas import tpu as pltpu

_BN_EPS = 1e-5
_LPAD = 128  # left/right zero border (in lanes) of the flattened-pad scratch


def _sigmoid(x):
    # Written explicitly (exp + divide) so it lowers cleanly in-kernel and the
    # pure-JAX reference uses the exact same formula.
    return 1.0 / (1.0 + jnp.exp(-x))


def _resblock_kernel(x_ref, w1_ref, s1_ref, b1_ref, w2_ref, s2_ref, b2_ref,
                     o_ref, pad_ref, *, H, W, compute_dtype):
    """Fused ResBlock forward for one batch element.

    x_ref  : (1, C, H*W)   input, spatial flattened into lanes (f32)
    w1_ref : (9, 2C, C)    conv1 weights, one (Cout, Cin) matrix per 3x3 tap (bf16)
    s1_ref : (2C, 1)  b1_ref: (2C, 1)   folded BatchNorm1 scale / bias (f32)
    w2_ref : (9, C, C)     conv2 weights (bf16)
    s2_ref : (C, 1)   b2_ref: (C, 1)    folded BatchNorm2 scale / bias (f32)
    o_ref  : (1, C, H*W)   output (f32), lane-dense last dim
    pad_ref: (C, H*W + 2*_LPAD) f32 VMEM scratch: zero-bordered flattened image
    """
    C = x_ref.shape[1]
    HW = H * W

    # Zero the scratch so its border stays zero for both convs (unconditional:
    # safe regardless of how grid steps are split across TensorCores).
    pad_ref[...] = jnp.zeros(pad_ref.shape, pad_ref.dtype)

    # Column index of every output position (hoisted once).  Used to mask the
    # dw = +/-1 taps: the flattened lane-shift wraps across image rows, and the
    # mask kills exactly those wrapped lanes.
    col = jax.lax.broadcasted_iota(jnp.int32, (C, HW), 1) % W
    ok_left = col >= 1        # tap reads (h+dh, w-1): invalid at w == 0
    ok_right = col <= W - 2   # tap reads (h+dh, w+1): invalid at w == W-1

    def conv3x3(a_f32, w_taps_ref):
        """a_f32: (C, HW) f32 value  ->  (Cout, HW) f32 conv output."""
        cout = w_taps_ref.shape[1]
        # Refresh the interior of the zero-bordered flattened image (aligned
        # lane-offset store; the zero border provides the padding=1 semantics).
        pad_ref[:, _LPAD:_LPAD + HW] = a_f32
        acc = jnp.zeros((cout, HW), jnp.float32)
        t = 0
        for dh in (-1, 0, 1):
            for dw in (-1, 0, 1):
                start = _LPAD + dh * W + dw
                # Contiguous lane-window load == shifted image with zero fill
                # (no reshape / relayout per tap).
                z = pad_ref[:, start:start + HW].astype(compute_dtype)
                if dw == -1:
                    z = jnp.where(ok_left, z, jnp.zeros_like(z))
                elif dw == 1:
                    z = jnp.where(ok_right, z, jnp.zeros_like(z))
                # (Cout, Cin) x (Cin, HW): spatial stays lane-dense on the MXU,
                # bf16 operands, f32 accumulation.
                acc = acc + jnp.dot(w_taps_ref[t], z,
                                    preferred_element_type=jnp.float32)
                t += 1
        return acc

    x_f32 = x_ref[0]                                   # (C, HW) f32

    # conv1 (C -> 2C) + BatchNorm1 (eval mode, folded per-channel scale/bias)
    h = conv3x3(x_f32, w1_ref)                         # (2C, HW) f32
    h = h * s1_ref[...] + b1_ref[...]

    # GLU: first half of channels * sigmoid(second half)  -> (C, HW)
    g = h[:C] * _sigmoid(h[C:])

    # conv2 (C -> C) + BatchNorm2
    out = conv3x3(g, w2_ref)                           # (C, HW) f32
    out = out * s2_ref[...] + b2_ref[...]

    # Residual connection.
    out = out + x_f32
    o_ref[0] = out.astype(o_ref.dtype)


def resblock_forward(x_nchw, params, *, compute_dtype=jnp.bfloat16):
    """Runs the fused ResBlock kernel.  x_nchw: (N, C, H, W) float32."""
    N, C, H, W = x_nchw.shape
    HW = H * W

    # (KH, KW, Cin, Cout) -> (9, Cout, Cin): one weight matrix per tap, tap order
    # matching the kernel's (dh, dw) loop; cast to bf16 for the MXU.
    w1 = jnp.transpose(params["w1"], (0, 1, 3, 2)).reshape(9, 2 * C, C)
    w2 = jnp.transpose(params["w2"], (0, 1, 3, 2)).reshape(9, C, C)
    w1 = w1.astype(compute_dtype)
    w2 = w2.astype(compute_dtype)

    s1 = params["s1"].reshape(2 * C, 1).astype(jnp.float32)
    b1 = params["b1"].reshape(2 * C, 1).astype(jnp.float32)
    s2 = params["s2"].reshape(C, 1).astype(jnp.float32)
    b2 = params["b2"].reshape(C, 1).astype(jnp.float32)

    # NCHW -> (N, C, H*W): pure reshape (no transpose), puts spatial in lanes.
    x_flat = x_nchw.reshape(N, C, HW)

    kernel = functools.partial(_resblock_kernel, H=H, W=W,
                               compute_dtype=compute_dtype)

    out_flat = pl.pallas_call(
        kernel,
        out_shape=jax.ShapeDtypeStruct((N, C, HW), x_nchw.dtype),
        grid_spec=pltpu.PrefetchScalarGridSpec(
            num_scalar_prefetch=0,
            grid=(N,),
            in_specs=[
                pl.BlockSpec((1, C, HW), lambda n: (n, 0, 0)),
                pl.BlockSpec((9, 2 * C, C), lambda n: (0, 0, 0)),
                pl.BlockSpec((2 * C, 1), lambda n: (0, 0)),
                pl.BlockSpec((2 * C, 1), lambda n: (0, 0)),
                pl.BlockSpec((9, C, C), lambda n: (0, 0, 0)),
                pl.BlockSpec((C, 1), lambda n: (0, 0)),
                pl.BlockSpec((C, 1), lambda n: (0, 0)),
            ],
            out_specs=pl.BlockSpec((1, C, HW), lambda n: (n, 0, 0)),
            scratch_shapes=[pltpu.VMEM((C, HW + 2 * _LPAD), jnp.float32)],
        ),
        compiler_params=pltpu.CompilerParams(
            dimension_semantics=("parallel",),
            vmem_limit_bytes=32 * 1024 * 1024,
        ),
    )(x_flat, w1, s1, b1, w2, s2, b2)

    return out_flat.reshape(N, C, H, W)


class ResBlockPallas:
    """JAX/Pallas port of ResBlock(channel_num) with eval-mode BatchNorm."""

    def __init__(self, channel_num, key):
        C = channel_num
        ks = jax.random.split(key, 10)
        bound = float((C * 9) ** -0.5)  # kaiming-uniform-style fan_in bound
        w1 = jax.random.uniform(ks[0], (3, 3, C, 2 * C), jnp.float32, -bound, bound)
        w2 = jax.random.uniform(ks[1], (3, 3, C, C), jnp.float32, -bound, bound)
        # BatchNorm2d parameters + running statistics (eval / inference mode).
        g1 = jax.random.uniform(ks[2], (2 * C,), jnp.float32, 0.5, 1.5)
        be1 = 0.1 * jax.random.normal(ks[3], (2 * C,), jnp.float32)
        m1 = 0.1 * jax.random.normal(ks[4], (2 * C,), jnp.float32)
        v1 = jax.random.uniform(ks[5], (2 * C,), jnp.float32, 0.5, 1.5)
        g2 = jax.random.uniform(ks[6], (C,), jnp.float32, 0.5, 1.5)
        be2 = 0.1 * jax.random.normal(ks[7], (C,), jnp.float32)
        m2 = 0.1 * jax.random.normal(ks[8], (C,), jnp.float32)
        v2 = jax.random.uniform(ks[9], (C,), jnp.float32, 0.5, 1.5)
        # Fold BN into per-channel scale / bias.
        s1 = g1 / jnp.sqrt(v1 + _BN_EPS)
        s2 = g2 / jnp.sqrt(v2 + _BN_EPS)
        self.params = {
            "w1": w1, "w2": w2,
            "s1": s1, "b1": be1 - m1 * s1,
            "s2": s2, "b2": be2 - m2 * s2,
        }

    def __call__(self, x_nchw):
        return resblock_forward(x_nchw, self.params)


# ------------------------- pure-JAX reference --------------------------------

def _ref_conv3x3_nchw(x, w_hwio, cast_dtype=None):
    w_oihw = jnp.transpose(w_hwio, (3, 2, 0, 1))
    if cast_dtype is not None:
        x = x.astype(cast_dtype)
        w_oihw = w_oihw.astype(cast_dtype)
    return jax.lax.conv_general_dilated(
        x, w_oihw, window_strides=(1, 1), padding=((1, 1), (1, 1)),
        dimension_numbers=("NCHW", "OIHW", "NCHW"),
        preferred_element_type=jnp.float32)


def _ref_resblock(x, params, cast_dtype=None):
    C = x.shape[1]

    def bn(v, s, b):
        return v * s[None, :, None, None] + b[None, :, None, None]

    h = bn(_ref_conv3x3_nchw(x, params["w1"], cast_dtype),
           params["s1"], params["b1"])
    g = h[:, :C] * _sigmoid(h[:, C:])
    o = bn(_ref_conv3x3_nchw(g, params["w2"], cast_dtype),
           params["s2"], params["b2"])
    return o + x


if __name__ == "__main__":
    key = jax.random.PRNGKey(0)
    k_param, k_x = jax.random.split(key)

    N, C, H, W = 2, 4, 16, 16
    x = jax.random.normal(k_x, (N, C, H, W), dtype=jnp.float32)

    block = ResBlockPallas(C, k_param)

    out = jax.block_until_ready(block(x))
    assert out.shape == (N, C, H, W)

    # Reference 1: convs fed with the same bf16-rounded inputs (should match to
    # f32-accumulation noise).
    ref_bf16 = _ref_resblock(x, block.params, cast_dtype=jnp.bfloat16)
    # Reference 2: full-f32 reference; only the bf16 rounding of the MXU inputs
    # differs.
    ref_f32 = _ref_resblock(x, block.params, cast_dtype=None)

    err_bf16 = float(jnp.max(jnp.abs(out - ref_bf16)))
    err_f32 = float(jnp.max(jnp.abs(out - ref_f32)))
    assert jnp.allclose(out, ref_bf16, atol=1e-4, rtol=1e-4), err_bf16
    assert jnp.allclose(out, ref_f32, atol=5e-2, rtol=5e-2), err_f32

    print("KERNEL_OK")
</pallas_src>

<mosaic_0001>
module attributes {stable_mosaic.version = 11 : i64} {
  func.func @_resblock_kernel(%arg0: i32, %arg1: memref<1x4x256xf32, #tpu.memory_space<vmem>>, %arg2: memref<9x8x4xbf16, #tpu.memory_space<vmem>>, %arg3: memref<8x1xf32, #tpu.memory_space<vmem>>, %arg4: memref<8x1xf32, #tpu.memory_space<vmem>>, %arg5: memref<9x4x4xbf16, #tpu.memory_space<vmem>>, %arg6: memref<4x1xf32, #tpu.memory_space<vmem>>, %arg7: memref<4x1xf32, #tpu.memory_space<vmem>>, %arg8: memref<1x4x256xf32, #tpu.memory_space<vmem>>, %arg9: memref<4x512xf32, #tpu.memory_space<vmem>>) attributes {dimension_semantics = [#tpu.dimension_semantics<parallel>], iteration_bounds = array<i64: 2>, scalar_prefetch = 0 : i64, scratch_operands = 1 : i64, tpu.core_type = #tpu.core_type<tc>, window_params = [{transform_indices = @transform_0, window_bounds = array<i64: 1, 4, 256>}, {pipeline_mode = #tpu.pipeline_mode<synchronous>, transform_indices = @transform_1, window_bounds = array<i64: 9, 8, 4>}, {pipeline_mode = #tpu.pipeline_mode<synchronous>, transform_indices = @transform_2, window_bounds = array<i64: 8, 1>}, {pipeline_mode = #tpu.pipeline_mode<synchronous>, transform_indices = @transform_3, window_bounds = array<i64: 8, 1>}, {pipeline_mode = #tpu.pipeline_mode<synchronous>, transform_indices = @transform_4, window_bounds = array<i64: 9, 4, 4>}, {pipeline_mode = #tpu.pipeline_mode<synchronous>, transform_indices = @transform_5, window_bounds = array<i64: 4, 1>}, {pipeline_mode = #tpu.pipeline_mode<synchronous>, transform_indices = @transform_6, window_bounds = array<i64: 4, 1>}, {transform_indices = @transform_7, window_bounds = array<i64: 1, 4, 256>}]} {
    %cst = arith.constant 0.000000e+00 : f32
    %0 = vector.broadcast %cst : f32 to vector<4x512xf32>
    %c0 = arith.constant 0 : index
    %c0_0 = arith.constant 0 : index
    %1 = vector.load %arg9[%c0, %c0_0] : memref<4x512xf32, #tpu.memory_space<vmem>>, vector<4x512xf32>
    tpu.vector_store %arg9[%c0, %c0_0], %0 {strides = array<i32>} : memref<4x512xf32, #tpu.memory_space<vmem>>, vector<4x512xf32>,
    %2 = tpu.iota {dimensions = array<i32: 1>} : vector<4x256xi32>
    %c16_i32 = arith.constant 16 : i32
    %c0_i32 = arith.constant 0 : i32
    %3 = arith.cmpi eq, %c16_i32, %c0_i32 : i32
    %c1_i32 = arith.constant 1 : i32
    %4 = arith.select %3, %c1_i32, %c16_i32 : i32
    %5 = vector.broadcast %4 : i32 to vector<4x256xi32>
    %6 = arith.remsi %2, %5 : vector<4x256xi32>
    %c0_i32_1 = arith.constant 0 : i32
    %7 = vector.broadcast %c0_i32_1 : i32 to vector<4x256xi32>
    %8 = arith.cmpi ne, %6, %7 : vector<4x256xi32>
    %c0_i32_2 = arith.constant 0 : i32
    %9 = vector.broadcast %c0_i32_2 : i32 to vector<4x256xi32>
    %10 = arith.cmpi slt, %6, %9 : vector<4x256xi32>
    %c0_i32_3 = arith.constant 0 : i32
    %11 = arith.cmpi slt, %4, %c0_i32_3 : i32
    %12 = vector.broadcast %11 : i1 to vector<4x256xi1>
    %13 = vector.broadcast %12 : vector<4x256xi1> to vector<4x256xi1>
    %14 = arith.xori %10, %13 : vector<4x256xi1>
    %15 = arith.andi %14, %8 : vector<4x256xi1>
    %16 = vector.broadcast %4 : i32 to vector<4x256xi32>
    %17 = arith.addi %6, %16 : vector<4x256xi32>
    %18 = arith.select %15, %17, %6 : vector<4x256xi1>, vector<4x256xi32>
    %c1_i32_4 = arith.constant 1 : i32
    %19 = vector.broadcast %c1_i32_4 : i32 to vector<4x256xi32>
    %20 = arith.cmpi sge, %18, %19 : vector<4x256xi32>
    %c14_i32 = arith.constant 14 : i32
    %21 = vector.broadcast %c14_i32 : i32 to vector<4x256xi32>
    %22 = arith.cmpi sle, %18, %21 : vector<4x256xi32>
    %c0_5 = arith.constant 0 : index
    %c0_6 = arith.constant 0 : index
    %c0_7 = arith.constant 0 : index
    %23 = vector.load %arg1[%c0_5, %c0_6, %c0_7] : memref<1x4x256xf32, #tpu.memory_space<vmem>>, vector<1x4x256xf32>
    %24 = vector.shape_cast %23 : vector<1x4x256xf32> to vector<4x256xf32>
    %c0_8 = arith.constant 0 : index
    %c128 = arith.constant 128 : index
    %25 = vector.load %arg9[%c0_8, %c128] : memref<4x512xf32, #tpu.memory_space<vmem>>, vector<4x256xf32>
    tpu.vector_store %arg9[%c0_8, %c128], %24 {strides = array<i32>} : memref<4x512xf32, #tpu.memory_space<vmem>>, vector<4x256xf32>,
    %cst_9 = arith.constant 0.000000e+00 : f32
    %26 = vector.broadcast %cst_9 : f32 to vector<8x256xf32>
    %c0_10 = arith.constant 0 : index
    %c111 = arith.constant 111 : index
    %27 = vector.load %arg9[%c0_10, %c111] : memref<4x512xf32, #tpu.memory_space<vmem>>, vector<4x256xf32>
    %28 = arith.truncf %27 : vector<4x256xf32> to vector<4x256xbf16>
    %cst_11 = arith.constant 0.000000e+00 : bf16
    %29 = vector.broadcast %cst_11 : bf16 to vector<4x256xbf16>
    %30 = arith.select %20, %28, %29 : vector<4x256xi1>, vector<4x256xbf16>
    %c0_12 = arith.constant 0 : index
    %c0_13 = arith.constant 0 : index
    %c0_14 = arith.constant 0 : index
    %31 = vector.load %arg2[%c0_12, %c0_13, %c0_14] : memref<9x8x4xbf16, #tpu.memory_space<vmem>>, vector<1x8x4xbf16>
    %32 = vector.shape_cast %31 : vector<1x8x4xbf16> to vector<8x4xbf16>
    %cst_15 = arith.constant dense<0.000000e+00> : vector<8x256xf32>
    %33 = tpu.matmul %32, %30, %cst_15 {dimension_numbers = #tpu.dot_dimension_numbers<[1], [0], [0], [1], [0, 0, 1, 1], [], []>} : vector<8x4xbf16>, vector<4x256xbf16>, vector<8x256xf32> -> vector<8x256xf32>
    %34 = arith.addf %26, %33 : vector<8x256xf32>
    %c0_16 = arith.constant 0 : index
    %c112 = arith.constant 112 : index
    %35 = vector.load %arg9[%c0_16, %c112] : memref<4x512xf32, #tpu.memory_space<vmem>>, vector<4x256xf32>
    %36 = arith.truncf %35 : vector<4x256xf32> to vector<4x256xbf16>
    %c1 = arith.constant 1 : index
    %c0_17 = arith.constant 0 : index
    %c0_18 = arith.constant 0 : index
    %37 = vector.load %arg2[%c1, %c0_17, %c0_18] : memref<9x8x4xbf16, #tpu.memory_space<vmem>>, vector<1x8x4xbf16>
    %38 = vector.shape_cast %37 : vector<1x8x4xbf16> to vector<8x4xbf16>
    %cst_19 = arith.constant dense<0.000000e+00> : vector<8x256xf32>
    %39 = tpu.matmul %38, %36, %cst_19 {dimension_numbers = #tpu.dot_dimension_numbers<[1], [0], [0], [1], [0, 0, 1, 1], [], []>} : vector<8x4xbf16>, vector<4x256xbf16>, vector<8x256xf32> -> vector<8x256xf32>
    %40 = arith.addf %34, %39 : vector<8x256xf32>
    %c0_20 = arith.constant 0 : index
    %c113 = arith.constant 113 : index
    %41 = vector.load %arg9[%c0_20, %c113] : memref<4x512xf32, #tpu.memory_space<vmem>>, vector<4x256xf32>
    %42 = arith.truncf %41 : vector<4x256xf32> to vector<4x256xbf16>
    %cst_21 = arith.constant 0.000000e+00 : bf16
    %43 = vector.broadcast %cst_21 : bf16 to vector<4x256xbf16>
    %44 = arith.select %22, %42, %43 : vector<4x256xi1>, vector<4x256xbf16>
    %c2 = arith.constant 2 : index
    %c0_22 = arith.constant 0 : index
    %c0_23 = arith.constant 0 : index
    %45 = vector.load %arg2[%c2, %c0_22, %c0_23] : memref<9x8x4xbf16, #tpu.memory_space<vmem>>, vector<1x8x4xbf16>
    %46 = vector.shape_cast %45 : vector<1x8x4xbf16> to vector<8x4xbf16>
    %cst_24 = arith.constant dense<0.000000e+00> : vector<8x256xf32>
    %47 = tpu.matmul %46, %44, %cst_24 {dimension_numbers = #tpu.dot_dimension_numbers<[1], [0], [0], [1], [0, 0, 1, 1], [], []>} : vector<8x4xbf16>, vector<4x256xbf16>, vector<8x256xf32> -> vector<8x256xf32>
    %48 = arith.addf %40, %47 : vector<8x256xf32>
    %c0_25 = arith.constant 0 : index
    %c127 = arith.constant 127 : index
    %49 = vector.load %arg9[%c0_25, %c127] : memref<4x512xf32, #tpu.memory_space<vmem>>, vector<4x256xf32>
    %50 = arith.truncf %49 : vector<4x256xf32> to vector<4x256xbf16>
    %cst_26 = arith.constant 0.000000e+00 : bf16
    %51 = vector.broadcast %cst_26 : bf16 to vector<4x256xbf16>
    %52 = arith.select %20, %50, %51 : vector<4x256xi1>, vector<4x256xbf16>
    %c3 = arith.constant 3 : index
    %c0_27 = arith.constant 0 : index
    %c0_28 = arith.constant 0 : index
    %53 = vector.load %arg2[%c3, %c0_27, %c0_28] : memref<9x8x4xbf16, #tpu.memory_space<vmem>>, vector<1x8x4xbf16>
    %54 = vector.shape_cast %53 : vector<1x8x4xbf16> to vector<8x4xbf16>
    %cst_29 = arith.constant dense<0.000000e+00> : vector<8x256xf32>
    %55 = tpu.matmul %54, %52, %cst_29 {dimension_numbers = #tpu.dot_dimension_numbers<[1], [0], [0], [1], [0, 0, 1, 1], [], []>} : vector<8x4xbf16>, vector<4x256xbf16>, vector<8x256xf32> -> vector<8x256xf32>
    %56 = arith.addf %48, %55 : vector<8x256xf32>
    %c0_30 = arith.constant 0 : index
    %c128_31 = arith.constant 128 : index
    %57 = vector.load %arg9[%c0_30, %c128_31] : memref<4x512xf32, #tpu.memory_space<vmem>>, vector<4x256xf32>
    %58 = arith.truncf %57 : vector<4x256xf32> to vector<4x256xbf16>
    %c4 = arith.constant 4 : index
    %c0_32 = arith.constant 0 : index
    %c0_33 = arith.constant 0 : index
    %59 = vector.load %arg2[%c4, %c0_32, %c0_33] : memref<9x8x4xbf16, #tpu.memory_space<vmem>>, vector<1x8x4xbf16>
    %60 = vector.shape_cast %59 : vector<1x8x4xbf16> to vector<8x4xbf16>
    %cst_34 = arith.constant dense<0.000000e+00> : vector<8x256xf32>
    %61 = tpu.matmul %60, %58, %cst_34 {dimension_numbers = #tpu.dot_dimension_numbers<[1], [0], [0], [1], [0, 0, 1, 1], [], []>} : vector<8x4xbf16>, vector<4x256xbf16>, vector<8x256xf32> -> vector<8x256xf32>
    %62 = arith.addf %56, %61 : vector<8x256xf32>
    %c0_35 = arith.constant 0 : index
    %c129 = arith.constant 129 : index
    %63 = vector.load %arg9[%c0_35, %c129] : memref<4x512xf32, #tpu.memory_space<vmem>>, vector<4x256xf32>
    %64 = arith.truncf %63 : vector<4x256xf32> to vector<4x256xbf16>
    %cst_36 = arith.constant 0.000000e+00 : bf16
    %65 = vector.broadcast %cst_36 : bf16 to vector<4x256xbf16>
    %66 = arith.select %22, %64, %65 : vector<4x256xi1>, vector<4x256xbf16>
    %c5 = arith.constant 5 : index
    %c0_37 = arith.constant 0 : index
    %c0_38 = arith.constant 0 : index
    %67 = vector.load %arg2[%c5, %c0_37, %c0_38] : memref<9x8x4xbf16, #tpu.memory_space<vmem>>, vector<1x8x4xbf16>
    %68 = vector.shape_cast %67 : vector<1x8x4xbf16> to vector<8x4xbf16>
    %cst_39 = arith.constant dense<0.000000e+00> : vector<8x256xf32>
    %69 = tpu.matmul %68, %66, %cst_39 {dimension_numbers = #tpu.dot_dimension_numbers<[1], [0], [0], [1], [0, 0, 1, 1], [], []>} : vector<8x4xbf16>, vector<4x256xbf16>, vector<8x256xf32> -> vector<8x256xf32>
    %70 = arith.addf %62, %69 : vector<8x256xf32>
    %c0_40 = arith.constant 0 : index
    %c143 = arith.constant 143 : index
    %71 = vector.load %arg9[%c0_40, %c143] : memref<4x512xf32, #tpu.memory_space<vmem>>, vector<4x256xf32>
    %72 = arith.truncf %71 : vector<4x256xf32> to vector<4x256xbf16>
    %cst_41 = arith.constant 0.000000e+00 : bf16
    %73 = vector.broadcast %cst_41 : bf16 to vector<4x256xbf16>
    %74 = arith.select %20, %72, %73 : vector<4x256xi1>, vector<4x256xbf16>
    %c6 = arith.constant 6 : index
    %c0_42 = arith.constant 0 : index
    %c0_43 = arith.constant 0 : index
    %75 = vector.load %arg2[%c6, %c0_42, %c0_43] : memref<9x8x4xbf16, #tpu.memory_space<vmem>>, vector<1x8x4xbf16>
    %76 = vector.shape_cast %75 : vector<1x8x4xbf16> to vector<8x4xbf16>
    %cst_44 = arith.constant dense<0.000000e+00> : vector<8x256xf32>
    %77 = tpu.matmul %76, %74, %cst_44 {dimension_numbers = #tpu.dot_dimension_numbers<[1], [0], [0], [1], [0, 0, 1, 1], [], []>} : vector<8x4xbf16>, vector<4x256xbf16>, vector<8x256xf32> -> vector<8x256xf32>
    %78 = arith.addf %70, %77 : vector<8x256xf32>
    %c0_45 = arith.constant 0 : index
    %c144 = arith.constant 144 : index
    %79 = vector.load %arg9[%c0_45, %c144] : memref<4x512xf32, #tpu.memory_space<vmem>>, vector<4x256xf32>
    %80 = arith.truncf %79 : vector<4x256xf32> to vector<4x256xbf16>
    %c7 = arith.constant 7 : index
    %c0_46 = arith.constant 0 : index
    %c0_47 = arith.constant 0 : index
    %81 = vector.load %arg2[%c7, %c0_46, %c0_47] : memref<9x8x4xbf16, #tpu.memory_space<vmem>>, vector<1x8x4xbf16>
    %82 = vector.shape_cast %81 : vector<1x8x4xbf16> to vector<8x4xbf16>
    %cst_48 = arith.constant dense<0.000000e+00> : vector<8x256xf32>
    %83 = tpu.matmul %82, %80, %cst_48 {dimension_numbers = #tpu.dot_dimension_numbers<[1], [0], [0], [1], [0, 0, 1, 1], [], []>} : vector<8x4xbf16>, vector<4x256xbf16>, vector<8x256xf32> -> vector<8x256xf32>
    %84 = arith.addf %78, %83 : vector<8x256xf32>
    %c0_49 = arith.constant 0 : index
    %c145 = arith.constant 145 : index
    %85 = vector.load %arg9[%c0_49, %c145] : memref<4x512xf32, #tpu.memory_space<vmem>>, vector<4x256xf32>
    %86 = arith.truncf %85 : vector<4x256xf32> to vector<4x256xbf16>
    %cst_50 = arith.constant 0.000000e+00 : bf16
    %87 = vector.broadcast %cst_50 : bf16 to vector<4x256xbf16>
    %88 = arith.select %22, %86, %87 : vector<4x256xi1>, vector<4x256xbf16>
    %c8 = arith.constant 8 : index
    %c0_51 = arith.constant 0 : index
    %c0_52 = arith.constant 0 : index
    %89 = vector.load %arg2[%c8, %c0_51, %c0_52] : memref<9x8x4xbf16, #tpu.memory_space<vmem>>, vector<1x8x4xbf16>
    %90 = vector.shape_cast %89 : vector<1x8x4xbf16> to vector<8x4xbf16>
    %cst_53 = arith.constant dense<0.000000e+00> : vector<8x256xf32>
    %91 = tpu.matmul %90, %88, %cst_53 {dimension_numbers = #tpu.dot_dimension_numbers<[1], [0], [0], [1], [0, 0, 1, 1], [], []>} : vector<8x4xbf16>, vector<4x256xbf16>, vector<8x256xf32> -> vector<8x256xf32>
    %92 = arith.addf %84, %91 : vector<8x256xf32>
    %c0_54 = arith.constant 0 : index
    %c0_55 = arith.constant 0 : index
    %93 = vector.load %arg3[%c0_54, %c0_55] : memref<8x1xf32, #tpu.memory_space<vmem>>, vector<8x1xf32>
    %94 = vector.broadcast %93 : vector<8x1xf32> to vector<8x256xf32>
    %95 = arith.mulf %92, %94 : vector<8x256xf32>
    %c0_56 = arith.constant 0 : index
    %c0_57 = arith.constant 0 : index
    %96 = vector.load %arg4[%c0_56, %c0_57] : memref<8x1xf32, #tpu.memory_space<vmem>>, vector<8x1xf32>
    %97 = vector.broadcast %96 : vector<8x1xf32> to vector<8x256xf32>
    %98 = arith.addf %95, %97 : vector<8x256xf32>
    %99 = vector.extract_strided_slice %98 {offsets = [0, 0], sizes = [4, 256], strides = [1, 1]} : vector<8x256xf32> to vector<4x256xf32>
    %100 = vector.extract_strided_slice %98 {offsets = [4, 0], sizes = [4, 256], strides = [1, 1]} : vector<8x256xf32> to vector<4x256xf32>
    %cst_58 = arith.constant 0.000000e+00 : f32
    %101 = vector.broadcast %cst_58 : f32 to vector<4x256xf32>
    %102 = arith.subf %101, %100 : vector<4x256xf32>
    %103 = math.exp %102 : vector<4x256xf32>
    %cst_59 = arith.constant 1.000000e+00 : f32
    %104 = vector.broadcast %cst_59 : f32 to vector<4x256xf32>
    %105 = arith.addf %104, %103 : vector<4x256xf32>
    %cst_60 = arith.constant 1.000000e+00 : f32
    %106 = vector.broadcast %cst_60 : f32 to vector<4x256xf32>
    %107 = arith.divf %106, %105 : vector<4x256xf32>
    %108 = arith.mulf %99, %107 : vector<4x256xf32>
    %c0_61 = arith.constant 0 : index
    %c128_62 = arith.constant 128 : index
    %109 = vector.load %arg9[%c0_61, %c128_62] : memref<4x512xf32, #tpu.memory_space<vmem>>, vector<4x256xf32>
    tpu.vector_store %arg9[%c0_61, %c128_62], %108 {strides = array<i32>} : memref<4x512xf32, #tpu.memory_space<vmem>>, vector<4x256xf32>,
    %cst_63 = arith.constant 0.000000e+00 : f32
    %110 = vector.broadcast %cst_63 : f32 to vector<4x256xf32>
    %c0_64 = arith.constant 0 : index
    %c111_65 = arith.constant 111 : index
    %111 = vector.load %arg9[%c0_64, %c111_65] : memref<4x512xf32, #tpu.memory_space<vmem>>, vector<4x256xf32>
    %112 = arith.truncf %111 : vector<4x256xf32> to vector<4x256xbf16>
    %cst_66 = arith.constant 0.000000e+00 : bf16
    %113 = vector.broadcast %cst_66 : bf16 to vector<4x256xbf16>
    %114 = arith.select %20, %112, %113 : vector<4x256xi1>, vector<4x256xbf16>
    %c0_67 = arith.constant 0 : index
    %c0_68 = arith.constant 0 : index
    %c0_69 = arith.constant 0 : index
    %115 = vector.load %arg5[%c0_67, %c0_68, %c0_69] : memref<9x4x4xbf16, #tpu.memory_space<vmem>>, vector<1x4x4xbf16>
    %116 = vector.shape_cast %115 : vector<1x4x4xbf16> to vector<4x4xbf16>
    %cst_70 = arith.constant dense<0.000000e+00> : vector<4x256xf32>
    %117 = tpu.matmul %116, %114, %cst_70 {dimension_numbers = #tpu.dot_dimension_numbers<[1], [0], [0], [1], [0, 0, 1, 1], [], []>} : vector<4x4xbf16>, vector<4x256xbf16>, vector<4x256xf32> -> vector<4x256xf32>
    %118 = arith.addf %110, %117 : vector<4x256xf32>
    %c0_71 = arith.constant 0 : index
    %c112_72 = arith.constant 112 : index
    %119 = vector.load %arg9[%c0_71, %c112_72] : memref<4x512xf32, #tpu.memory_space<vmem>>, vector<4x256xf32>
    %120 = arith.truncf %119 : vector<4x256xf32> to vector<4x256xbf16>
    %c1_73 = arith.constant 1 : index
    %c0_74 = arith.constant 0 : index
    %c0_75 = arith.constant 0 : index
    %121 = vector.load %arg5[%c1_73, %c0_74, %c0_75] : memref<9x4x4xbf16, #tpu.memory_space<vmem>>, vector<1x4x4xbf16>
    %122 = vector.shape_cast %121 : vector<1x4x4xbf16> to vector<4x4xbf16>
    %cst_76 = arith.constant dense<0.000000e+00> : vector<4x256xf32>
    %123 = tpu.matmul %122, %120, %cst_76 {dimension_numbers = #tpu.dot_dimension_numbers<[1], [0], [0], [1], [0, 0, 1, 1], [], []>} : vector<4x4xbf16>, vector<4x256xbf16>, vector<4x256xf32> -> vector<4x256xf32>
    %124 = arith.addf %118, %123 : vector<4x256xf32>
    %c0_77 = arith.constant 0 : index
    %c113_78 = arith.constant 113 : index
    %125 = vector.load %arg9[%c0_77, %c113_78] : memref<4x512xf32, #tpu.memory_space<vmem>>, vector<4x256xf32>
    %126 = arith.truncf %125 : vector<4x256xf32> to vector<4x256xbf16>
    %cst_79 = arith.constant 0.000000e+00 : bf16
    %127 = vector.broadcast %cst_79 : bf16 to vector<4x256xbf16>
    %128 = arith.select %22, %126, %127 : vector<4x256xi1>, vector<4x256xbf16>
    %c2_80 = arith.constant 2 : index
    %c0_81 = arith.constant 0 : index
    %c0_82 = arith.constant 0 : index
    %129 = vector.load %arg5[%c2_80, %c0_81, %c0_82] : memref<9x4x4xbf16, #tpu.memory_space<vmem>>, vector<1x4x4xbf16>
    %130 = vector.shape_cast %129 : vector<1x4x4xbf16> to vector<4x4xbf16>
    %cst_83 = arith.constant dense<0.000000e+00> : vector<4x256xf32>
    %131 = tpu.matmul %130, %128, %cst_83 {dimension_numbers = #tpu.dot_dimension_numbers<[1], [0], [0], [1], [0, 0, 1, 1], [], []>} : vector<4x4xbf16>, vector<4x256xbf16>, vector<4x256xf32> -> vector<4x256xf32>
    %132 = arith.addf %124, %131 : vector<4x256xf32>
    %c0_84 = arith.constant 0 : index
    %c127_85 = arith.constant 127 : index
    %133 = vector.load %arg9[%c0_84, %c127_85] : memref<4x512xf32, #tpu.memory_space<vmem>>, vector<4x256xf32>
    %134 = arith.truncf %133 : vector<4x256xf32> to vector<4x256xbf16>
    %cst_86 = arith.constant 0.000000e+00 : bf16
    %135 = vector.broadcast %cst_86 : bf16 to vector<4x256xbf16>
    %136 = arith.select %20, %134, %135 : vector<4x256xi1>, vector<4x256xbf16>
    %c3_87 = arith.constant 3 : index
    %c0_88 = arith.constant 0 : index
    %c0_89 = arith.constant 0 : index
    %137 = vector.load %arg5[%c3_87, %c0_88, %c0_89] : memref<9x4x4xbf16, #tpu.memory_space<vmem>>, vector<1x4x4xbf16>
    %138 = vector.shape_cast %137 : vector<1x4x4xbf16> to vector<4x4xbf16>
    %cst_90 = arith.constant dense<0.000000e+00> : vector<4x256xf32>
    %139 = tpu.matmul %138, %136, %cst_90 {dimension_numbers = #tpu.dot_dimension_numbers<[1], [0], [0], [1], [0, 0, 1, 1], [], []>} : vector<4x4xbf16>, vector<4x256xbf16>, vector<4x256xf32> -> vector<4x256xf32>
    %140 = arith.addf %132, %139 : vector<4x256xf32>
    %c0_91 = arith.constant 0 : index
    %c128_92 = arith.constant 128 : index
    %141 = vector.load %arg9[%c0_91, %c128_92] : memref<4x512xf32, #tpu.memory_space<vmem>>, vector<4x256xf32>
    %142 = arith.truncf %141 : vector<4x256xf32> to vector<4x256xbf16>
    %c4_93 = arith.constant 4 : index
    %c0_94 = arith.constant 0 : index
    %c0_95 = arith.constant 0 : index
    %143 = vector.load %arg5[%c4_93, %c0_94, %c0_95] : memref<9x4x4xbf16, #tpu.memory_space<vmem>>, vector<1x4x4xbf16>
    %144 = vector.shape_cast %143 : vector<1x4x4xbf16> to vector<4x4xbf16>
    %cst_96 = arith.constant dense<0.000000e+00> : vector<4x256xf32>
    %145 = tpu.matmul %144, %142, %cst_96 {dimension_numbers = #tpu.dot_dimension_numbers<[1], [0], [0], [1], [0, 0, 1, 1], [], []>} : vector<4x4xbf16>, vector<4x256xbf16>, vector<4x256xf32> -> vector<4x256xf32>
    %146 = arith.addf %140, %145 : vector<4x256xf32>
    %c0_97 = arith.constant 0 : index
    %c129_98 = arith.constant 129 : index
    %147 = vector.load %arg9[%c0_97, %c129_98] : memref<4x512xf32, #tpu.memory_space<vmem>>, vector<4x256xf32>
    %148 = arith.truncf %147 : vector<4x256xf32> to vector<4x256xbf16>
    %cst_99 = arith.constant 0.000000e+00 : bf16
    %149 = vector.broadcast %cst_99 : bf16 to vector<4x256xbf16>
    %150 = arith.select %22, %148, %149 : vector<4x256xi1>, vector<4x256xbf16>
    %c5_100 = arith.constant 5 : index
    %c0_101 = arith.constant 0 : index
    %c0_102 = arith.constant 0 : index
    %151 = vector.load %arg5[%c5_100, %c0_101, %c0_102] : memref<9x4x4xbf16, #tpu.memory_space<vmem>>, vector<1x4x4xbf16>
    %152 = vector.shape_cast %151 : vector<1x4x4xbf16> to vector<4x4xbf16>
    %cst_103 = arith.constant dense<0.000000e+00> : vector<4x256xf32>
    %153 = tpu.matmul %152, %150, %cst_103 {dimension_numbers = #tpu.dot_dimension_numbers<[1], [0], [0], [1], [0, 0, 1, 1], [], []>} : vector<4x4xbf16>, vector<4x256xbf16>, vector<4x256xf32> -> vector<4x256xf32>
    %154 = arith.addf %146, %153 : vector<4x256xf32>
    %c0_104 = arith.constant 0 : index
    %c143_105 = arith.constant 143 : index
    %155 = vector.load %arg9[%c0_104, %c143_105] : memref<4x512xf32, #tpu.memory_space<vmem>>, vector<4x256xf32>
    %156 = arith.truncf %155 : vector<4x256xf32> to vector<4x256xbf16>
    %cst_106 = arith.constant 0.000000e+00 : bf16
    %157 = vector.broadcast %cst_106 : bf16 to vector<4x256xbf16>
    %158 = arith.select %20, %156, %157 : vector<4x256xi1>, vector<4x256xbf16>
    %c6_107 = arith.constant 6 : index
    %c0_108 = arith.constant 0 : index
    %c0_109 = arith.constant 0 : index
    %159 = vector.load %arg5[%c6_107, %c0_108, %c0_109] : memref<9x4x4xbf16, #tpu.memory_space<vmem>>, vector<1x4x4xbf16>
    %160 = vector.shape_cast %159 : vector<1x4x4xbf16> to vector<4x4xbf16>
    %cst_110 = arith.constant dense<0.000000e+00> : vector<4x256xf32>
    %161 = tpu.matmul %160, %158, %cst_110 {dimension_numbers = #tpu.dot_dimension_numbers<[1], [0], [0], [1], [0, 0, 1, 1], [], []>} : vector<4x4xbf16>, vector<4x256xbf16>, vector<4x256xf32> -> vector<4x256xf32>
    %162 = arith.addf %154, %161 : vector<4x256xf32>
    %c0_111 = arith.constant 0 : index
    %c144_112 = arith.constant 144 : index
    %163 = vector.load %arg9[%c0_111, %c144_112] : memref<4x512xf32, #tpu.memory_space<vmem>>, vector<4x256xf32>
    %164 = arith.truncf %163 : vector<4x256xf32> to vector<4x256xbf16>
    %c7_113 = arith.constant 7 : index
    %c0_114 = arith.constant 0 : index
    %c0_115 = arith.constant 0 : index
    %165 = vector.load %arg5[%c7_113, %c0_114, %c0_115] : memref<9x4x4xbf16, #tpu.memory_space<vmem>>, vector<1x4x4xbf16>
    %166 = vector.shape_cast %165 : vector<1x4x4xbf16> to vector<4x4xbf16>
    %cst_116 = arith.constant dense<0.000000e+00> : vector<4x256xf32>
    %167 = tpu.matmul %166, %164, %cst_116 {dimension_numbers = #tpu.dot_dimension_numbers<[1], [0], [0], [1], [0, 0, 1, 1], [], []>} : vector<4x4xbf16>, vector<4x256xbf16>, vector<4x256xf32> -> vector<4x256xf32>
    %168 = arith.addf %162, %167 : vector<4x256xf32>
    %c0_117 = arith.constant 0 : index
    %c145_118 = arith.constant 145 : index
    %169 = vector.load %arg9[%c0_117, %c145_118] : memref<4x512xf32, #tpu.memory_space<vmem>>, vector<4x256xf32>
    %170 = arith.truncf %169 : vector<4x256xf32> to vector<4x256xbf16>
    %cst_119 = arith.constant 0.000000e+00 : bf16
    %171 = vector.broadcast %cst_119 : bf16 to vector<4x256xbf16>
    %172 = arith.select %22, %170, %171 : vector<4x256xi1>, vector<4x256xbf16>
    %c8_120 = arith.constant 8 : index
    %c0_121 = arith.constant 0 : index
    %c0_122 = arith.constant 0 : index
    %173 = vector.load %arg5[%c8_120, %c0_121, %c0_122] : memref<9x4x4xbf16, #tpu.memory_space<vmem>>, vector<1x4x4xbf16>
    %174 = vector.shape_cast %173 : vector<1x4x4xbf16> to vector<4x4xbf16>
    %cst_123 = arith.constant dense<0.000000e+00> : vector<4x256xf32>
    %175 = tpu.matmul %174, %172, %cst_123 {dimension_numbers = #tpu.dot_dimension_numbers<[1], [0], [0], [1], [0, 0, 1, 1], [], []>} : vector<4x4xbf16>, vector<4x256xbf16>, vector<4x256xf32> -> vector<4x256xf32>
    %176 = arith.addf %168, %175 : vector<4x256xf32>
    %c0_124 = arith.constant 0 : index
    %c0_125 = arith.constant 0 : index
    %177 = vector.load %arg6[%c0_124, %c0_125] : memref<4x1xf32, #tpu.memory_space<vmem>>, vector<4x1xf32>
    %178 = vector.broadcast %177 : vector<4x1xf32> to vector<4x256xf32>
    %179 = arith.mulf %176, %178 : vector<4x256xf32>
    %c0_126 = arith.constant 0 : index
    %c0_127 = arith.constant 0 : index
    %180 = vector.load %arg7[%c0_126, %c0_127] : memref<4x1xf32, #tpu.memory_space<vmem>>, vector<4x1xf32>
    %181 = vector.broadcast %180 : vector<4x1xf32> to vector<4x256xf32>
    %182 = arith.addf %179, %181 : vector<4x256xf32>
    %183 = arith.addf %182, %24 : vector<4x256xf32>
    %c0_128 = arith.constant 0 : index
    %c0_129 = arith.constant 0 : index
    %c0_130 = arith.constant 0 : index
    %184 = vector.load %arg8[%c0_128, %c0_129, %c0_130] : memref<1x4x256xf32, #tpu.memory_space<vmem>>, vector<1x4x256xf32>
    %185 = vector.shape_cast %184 : vector<1x4x256xf32> to vector<4x256xf32>
    %186 = vector.shape_cast %183 : vector<4x256xf32> to vector<1x4x256xf32>
    tpu.vector_store %arg8[%c0_128, %c0_129, %c0_130], %186 {strides = array<i32>} : memref<1x4x256xf32, #tpu.memory_space<vmem>>, vector<1x4x256xf32>,
    return
  }
  func.func @transform_0(%arg0: i32) -> (i32, i32, i32) {
    %c0_i32 = arith.constant 0 : i32
    %c0_i32_0 = arith.constant 0 : i32
    %c0_i32_1 = arith.constant 0 : i32
    return %arg0, %c0_i32, %c0_i32_0 : i32, i32, i32
  }
  func.func @transform_1(%arg0: i32) -> (i32, i32, i32) {
    %c0_i32 = arith.constant 0 : i32
    %c0_i32_0 = arith.constant 0 : i32
    %c0_i32_1 = arith.constant 0 : i32
    %c0_i32_2 = arith.constant 0 : i32
    return %c0_i32, %c0_i32_0, %c0_i32_1 : i32, i32, i32
  }
  func.func @transform_2(%arg0: i32) -> (i32, i32) {
    %c0_i32 = arith.constant 0 : i32
    %c0_i32_0 = arith.constant 0 : i32
    %c0_i32_1 = arith.constant 0 : i32
    return %c0_i32, %c0_i32_0 : i32, i32
  }
  func.func @transform_3(%arg0: i32) -> (i32, i32) {
    %c0_i32 = arith.constant 0 : i32
    %c0_i32_0 = arith.constant 0 : i32
    %c0_i32_1 = arith.constant 0 : i32
    return %c0_i32, %c0_i32_0 : i32, i32
  }
  func.func @transform_4(%arg0: i32) -> (i32, i32, i32) {
    %c0_i32 = arith.constant 0 : i32
    %c0_i32_0 = arith.constant 0 : i32
    %c0_i32_1 = arith.constant 0 : i32
    %c0_i32_2 = arith.constant 0 : i32
    return %c0_i32, %c0_i32_0, %c0_i32_1 : i32, i32, i32
  }
  func.func @transform_5(%arg0: i32) -> (i32, i32) {
    %c0_i32 = arith.constant 0 : i32
    %c0_i32_0 = arith.constant 0 : i32
    %c0_i32_1 = arith.constant 0 : i32
    return %c0_i32, %c0_i32_0 : i32, i32
  }
  func.func @transform_6(%arg0: i32) -> (i32, i32) {
    %c0_i32 = arith.constant 0 : i32
    %c0_i32_0 = arith.constant 0 : i32
    %c0_i32_1 = arith.constant 0 : i32
    return %c0_i32, %c0_i32_0 : i32, i32
  }
  func.func @transform_7(%arg0: i32) -> (i32, i32, i32) {
    %c0_i32 = arith.constant 0 : i32
    %c0_i32_0 = arith.constant 0 : i32
    %c0_i32_1 = arith.constant 0 : i32
    return %arg0, %c0_i32, %c0_i32_0 : i32, i32, i32
  }
}

</mosaic_0001>

<bundles_post_ra>
// kernel: tpu_custom_call.1
= control target key start
LH: loop header
LB: loop body
LE: loop exit
PB: predicated region body
PF: predicated region fallthrough
CT: control target
= control target key end

     0   :  { %12 = vsyncpa [#allocation4], 0  ;;  %s2748_s0 = inlined_call_operand.vmem [shape: f32[2,4,256], index: 0, kind: input, shape index: {}]   ;;  %s2749_s1 = inlined_call_operand.vmem [shape: bf16[9,8,4], index: 1, kind: input, shape index: {}]   ;;  %s2750_s2 = inlined_call_operand.vmem [shape: f32[8,1], index: 2, kind: input, shape index: {}]   ;;  %s2751_s3 = inlined_call_operand.vmem [shape: f32[8,1], index: 3, kind: input, shape index: {}]   ;;  %s2752_s4 = inlined_call_operand.vmem [shape: bf16[9,4,4], index: 4, kind: input, shape index: {}]   ;;  %s2753_s5 = inlined_call_operand.vmem [shape: f32[4,1], index: 5, kind: input, shape index: {}]   ;;  %s2754_s6 = inlined_call_operand.vmem [shape: f32[4,1], index: 6, kind: input, shape index: {}]   ;;  %s2755_s7 = inlined_call_operand.hbm [shape: f32[2,4,256], index: 7, kind: output, shape index: {}]  }
   0x1   :  { %14 = vsyncpa [#allocation4 + $0x1], 0  ;;  %s2065_s24 = smov 0   ;;  %s2067_s25 = smov 0  }
   0x2   :  { %s2069_s26 = smov 0   ;;  %s2071_s27 = smov 0  }
   0x3 LB: > { %s2086_s28 = sadd.s32 4294967295, %s2013_s27   ;;  %s1826_s29 = sadd.s32 4294967294, %s2013_s27   ;;  %s2013_s27 = sphi %s2071_s27, %s2972_s27   ;;  %s2009_s26 = sphi %s2069_s26, %s2971_s26   ;;  %s2005_s25 = sphi %s2067_s25, %s2970_s25   ;;  %s2001_s24 = sphi %s2065_s24, %s2969_s24  }
   0x4   : > { %s2090_s30 = sadd.s32 1, %s2013_s27   ;;  %s179_s8 = sadd.s32 1, %s2009_s26 }
   0x5   : > { %s176_s9 = ssub.s32 %s2013_s27, %s2090_s30  ;;  %p189_p0 = scmp.ne.s32.totalorder %s2009_s26, %s2005_s25 }
   0x6   : > { %p177_p1 = scmp.eq.s32.totalorder %s176_s9, 0  ;;  %p190_p2 = scmp.eq.s32.totalorder %s2086_s28, 1 }
   0x7   : > { %p195_p3 = scmp.ne.s32.totalorder %s2005_s25, %s2001_s24  ;;  %p196_p4 = scmp.eq.s32.totalorder %s1826_s29, 1 }
   0x8   : > { %s2101_s10 = scalar_select %p177_p1, %s2009_s26, %s179_s8  }
   0x9   : > { %p2103_p5 = por %p190_p2, %p189_p0  ;;  %p2107_p6 = por %p196_p4, %p195_p3 }
   0xa   : > { %p1829_p7 = scmp.ge.s32.totalorder %s2013_s27, 1  ;;  %p240_p8 = scmp.lt.s32.totalorder %s2013_s27, 3 }
   0xc   : > { %p241_p9 = pnand %p1829_p7, %p240_p8 }
   0xd   : > { %p272_p10 = scmp.lt.s32.totalorder (!%p241_p9), %s2086_s28, 1  ;;  %s2793_s18 = smov (!%p241_p9), 111  }
   0xe   : > { %244 = sbr.rel (%p241_p9) target bundleno = 916 (0x394), region = 48  ;;  %s2018_s19 = smov (!%p241_p9), 127  }
   0xf   : > { %s2019_s20 = smov (!%p241_p9), 15   ;;  %s2020_s21 = smov (!%p241_p9), 113  }
  0x10   : > { %s2021_s22 = smov (!%p241_p9), 1   ;;  %s2022_s23 = smov (!%p241_p9), 16  }
  0x11   : > { %s2023_s29 = smov (!%p241_p9), 17   ;;  %s2791_s8 = smov (!%p241_p9), 112  }
  0x12   : > { %s269_s16 = sand.u32 (!%p241_p9), 1, %s2005_s25   ;;  %s1971_s15 = scalar_lea.hbm (!%p241_p9), %s2755_s7, 16 }
  0x13   : > { %v282_v0 = vlaneseq  ;;  %v2015_v1 = vmov 0.0   ;;  %v2016_v2 = vmov 0   ;;  %s273_s13 = scalar_select %p272_p10, %s2086_s28, 1  ;;  %vm2758_vm6 = vcmask 908288  }
  0x14   : > { %280 = vst [vmem:[#allocation2] sm:$0xff] %v2015_v1  ;;  %1941 = vset.pattern.permute.xlu0 %v2016_v2  ;;  %1942 = vset.pattern.permute.xlu1 %v2016_v2  ;;  %vm2760_vm7 = vcmask 1039360   ;;  %v2149_v31 = vunpack.c.l.b16 %v2016_v2  ;;  %v2152_v32 = vunpack.c.h.b16 %v2016_v2  ;;  %v2804_v49 = vmov 0 }
  0x15   : > { %v283_v3 = vand.u32 127, %v282_v0  ;;  %281 = vst [vmem:[#allocation2 + $0x8] sm:$0xff] %v2015_v1  ;;  %s1890_s14 = sshll.u32 %s273_s13, 3  ;;  %vm2759_vm14 = vcmask 924672   ;;  %vm2761_vm15 = vcmask 7168  }
  0x16   : > { %s276_s17 = scalar_lea.vmem %s2748_s0, %s1890_s14 }
  0x17   : > { %v284_v4 = vadd.s32 128, %v283_v3  ;;  %v289_v5 = vand.u32 15, %v283_v3  ;;  %v2120_v7 = vld [vmem:[%s276_s17] sm:$0xff]  ;;  %v2810_v3 = vmov 0  ;;  %s1830_s17 = sshll.u32 %s269_s16, 3 }
  0x18   : > { %314 = vst [vmem:[#allocation2 + $0x4] sm:$0xff] %v2120_v7 }
  0x19   : > { %v296_v6 = vand.u32 15, %v284_v4  ;;  %vm309_vm0 = vcmp.ge.s32.totalorder %v289_v5, 1  ;;  %vm311_vm3 = vcmp.le.s32.totalorder %v289_v5, 14 }
  0x1b   : > { %vm310_vm1 = vcmp.ge.s32.totalorder %v296_v6, 1  ;;  %vm312_vm4 = vcmp.le.s32.totalorder %v296_v6, 14 }
  0x1c   : > { %vm330_vm2 = vmpackc.low %vm310_vm1, %vm309_vm0  ;;  %v708_v46 = vld [vmem:[#allocation2 + $0xc] sm:$0xf] }
  0x1d   : > { %v331_v8 = vsel %vm330_vm2, 65537, %v2016_v2  ;;  %vm488_vm5 = vmpackc.low %vm312_vm4, %vm311_vm3 }
  0x1e   : > { %332 = vrot.lane.b32.xlu0 %v331_v8, %s2793_s18  ;;  %582 = vrot.lane.b32.xlu1 %v331_v8, %s2018_s19  ;;  %v2128_v9 = vsel %vm488_vm5, 65537, %v2016_v2  ;;  %v2808_v2 = vmov 0 }
  0x1f   : > { %812 = vrot.lane.b32.xlu2 %v331_v8, %s2019_s20  ;;  %v316_v10 = vld [vmem:[#allocation2 + $0x8] sm:$0xf]  ;;  %v315_v11 = vld [vmem:[#allocation2] sm:$0xff] }
  0x20   : > { %321 = vst [vmem:[#allocation1 + $0x10] ss:$2 sm:$0xff] %v316_v10  ;;  %v355_v12 = vld [vmem:[#allocation2 + $0x8] sm:$0xf] }
  0x21   : > { %319 = vst [vmem:[#allocation1] ss:$2 sm:$0xff] %v315_v11  ;;  %v474_v22 = vld [vmem:[#allocation2 + $0x8] sm:$0xf] }
  0x22   : > { %v568_v26 = vld [vmem:[#allocation2 + $0x8] sm:$0xf] }
  0x26   : > { %490 = vrot.lane.b32.xlu0 %v2128_v9, %s2020_s21  ;;  %722 = vrot.lane.b32.xlu1 %v2128_v9, %s2021_s22 }
  0x27   : > { %v324_v13 = vld.sshfl [vmem:[#allocation1 + $0x10] sm:$0xff pattern:$0x75316420] }
  0x28   : > { %360 = vst [vmem:[#allocation1 + $0x10] ss:$2 sm:$0xff] %v355_v12  ;;  %v322_v14 = vld.sshfl [vmem:[#allocation1] sm:$0xff pattern:$0x75316420]  ;;  %v329_v35 = vpack.c.bf16 %v324_v13, %v324_v13 }
  0x29   : > { %v323_v15 = vld.sshfl [vmem:[#allocation1 + $0x8] sm:$0xff pattern:$0x75316420] }
  0x2a   : > { %358 = vst [vmem:[#allocation1] ss:$2 sm:$0xff] %v315_v11  ;;  %v328_v45 = vpack.c.bf16 %v323_v15, %v322_v14 }
  0x2f   : > { %v363_v16 = vld.sshfl [vmem:[#allocation1 + $0x10] sm:$0xff pattern:$0x75316420] }
  0x30   : > { %v369_v17 = vpack.c.bf16 %v363_v16, %v363_v16  ;;  %479 = vst [vmem:[#allocation1 + $0x10] ss:$2 sm:$0xff] %v474_v22  ;;  %v2812_v16 = vmov 0 }
  0x31   : > { %v361_v18 = vld.sshfl [vmem:[#allocation1] sm:$0xff pattern:$0x75316420]  ;;  %v362_v20 = vld.sshfl [vmem:[#allocation1 + $0x8] sm:$0xff pattern:$0x75316420] }
  0x32   : > { %379 = vrot.lane.b32.xlu0 %v369_v17, %s2022_s23  ;;  %v367_v19 = vpack.c.bf16 %v361_v18, %v361_v18  ;;  %v368_v21 = vpack.c.bf16 %v362_v20, %v362_v20  ;;  %477 = vst [vmem:[#allocation1] ss:$2 sm:$0xff] %v315_v11 }
  0x34   : > { %375 = vrot.lane.b32.xlu1 %v367_v19, %s2022_s23  ;;  %377 = vrot.lane.b32.xlu2 %v368_v21, %s2022_s23  ;;  %v2818_v21 = vmov 0  ;;  %v1439_v19 = vld [vmem:[#allocation2 + $0xc] sm:$0xf] }
  0x37   : > { %v2141_v25 = vld.sshfl [vmem:[#allocation1 + $0x10] sm:$0xff pattern:$0x75316420] }
  0x38   : > { %573 = vst [vmem:[#allocation1 + $0x10] ss:$2 sm:$0xff] %v568_v26  ;;  %v487_v55 = vpack.c.bf16 %v2141_v25, %v2141_v25 }
  0x39   : > { %v2137_v23 = vld.sshfl [vmem:[#allocation1] sm:$0xff pattern:$0x75316420]  ;;  %v2139_v24 = vld.sshfl [vmem:[#allocation1 + $0x8] sm:$0xff pattern:$0x75316420] }
  0x3a   : > { %571 = vst [vmem:[#allocation1] ss:$2 sm:$0xff] %v315_v11  ;;  %v486_v54 = vpack.c.bf16 %v2139_v24, %v2137_v23  ;;  %v798_v23 = vld [vmem:[#allocation2 + $0xc] sm:$0xf] }
  0x3f   : > { %v2154_v36 = vld.sshfl [vmem:[#allocation1 + $0x10] sm:$0xff pattern:$0x75316420] }
  0x40   : > { %713 = vst [vmem:[#allocation1 + $0x10] ss:$2 sm:$0xff] %v708_v46  ;;  %v2826_v46 = vmov 0 }
  0x41   : > { %v2143_v27 = vld.sshfl [vmem:[#allocation1] sm:$0xff pattern:$0x75316420]  ;;  %v2145_v28 = vld.sshfl [vmem:[#allocation1 + $0x8] sm:$0xff pattern:$0x75316420] }
  0x42   : > { %661 = vst [vmem:[#allocation1] ss:$2 sm:$0xff] %v2120_v7  ;;  %v580_v26 = vpack.c.bf16 %v2145_v28, %v2143_v27 }
  0x47   : > { %v716_v18 = vld.sshfl [vmem:[#allocation1 + $0x10] sm:$0xff pattern:$0x75316420] }
  0x48   : > { %803 = vst [vmem:[#allocation1 + $0x10] ss:$2 sm:$0xff] %v798_v23 }
  0x49   : > { %v2158_v41 = vld.sshfl [vmem:[#allocation1] sm:$0xff pattern:$0x75316420]  ;;  %v2160_v42 = vld.sshfl [vmem:[#allocation1 + $0x8] sm:$0xff pattern:$0x75316420] }
  0x4a   : > { %711 = vst [vmem:[#allocation1] ss:$2 sm:$0xff] %v2120_v7 }
  0x51   : > { %v2216_v11 = vld.sshfl [vmem:[#allocation1] sm:$0xff pattern:$0x75316420]  ;;  %v2218_v12 = vld.sshfl [vmem:[#allocation1 + $0x8] sm:$0xff pattern:$0x75316420] }
  0x52   : > { %801 = vst [vmem:[#allocation1] ss:$2 sm:$0xff] %v2120_v7 }
  0x79   : > { %v813_v17 = vpop.permute.xlu2 %812 }
  0x90   : > { %v333_v29 = vpop.permute.xlu0 %332  ;;  %v583_v30 = vpop.permute.xlu1 %582 }
  0x91   : > { %v334_v33 = vrot.slane %v333_v29, 4  ;;  %v584_v34 = vrot.slane %v583_v30, 4 }
  0x93   : > { %v336_v37 = vsel %vm2758_vm6, %v334_v33, %v333_v29  ;;  %v344_v38 = vunpack.c.l.b16 %v334_v33  ;;  %v345_v39 = vunpack.c.h.b16 %v334_v33  ;;  %v586_v40 = vsel %vm2760_vm7, %v584_v34, %v583_v30 }
  0x94   : > { %v337_v43 = vunpack.c.l.b16 %v336_v37  ;;  %v338_v44 = vunpack.c.h.b16 %v336_v37  ;;  %v587_v51 = vunpack.c.l.b16 %v586_v40  ;;  %v588_v52 = vunpack.c.h.b16 %v586_v40 }
  0x95   : > { %vm2164_vm8 = vcmp.ne.s32.totalorder %v344_v38, %v2149_v31  ;;  %vm2169_vm9 = vcmp.ne.s32.totalorder %v345_v39, %v2152_v32  ;;  %v594_v59 = vunpack.c.l.b16 %v584_v34  ;;  %v595_v0 = vunpack.c.h.b16 %v584_v34 }
  0x96   : > { %vm2174_vm10 = vcmp.ne.s32.totalorder %v337_v43, %v2149_v31  ;;  %vm2179_vm11 = vcmp.ne.s32.totalorder %v338_v44, %v2152_v32  ;;  %vm2757_vm12 = vmpackc.low %vm2169_vm9, %vm2164_vm8  ;;  %vm2206_vm0 = vcmp.ne.s32.totalorder %v587_v51, %v2149_v31  ;;  %vm2211_vm1 = vcmp.ne.s32.totalorder %v588_v52, %v2152_v32  ;;  %v804_v52 = vld.sshfl [vmem:[#allocation1] sm:$0xff pattern:$0x75316420] }
  0x97   : > { %v2805_v49 = vsel %vm2174_vm10, 4294967295, %v2804_v49  ;;  %vm2756_vm13 = vmpackc.low %vm2179_vm11, %vm2174_vm10  ;;  %v352_v53 = vsel %vm2757_vm12, %v329_v35, 0  ;;  %v2809_v2 = vsel %vm2206_vm0, 4294967295, %v2808_v2  ;;  %v2811_v3 = vsel %vm2211_vm1, 4294967295, %v2810_v3 }
  0x98   : > { %v425_v56 = vunpack.c.l.b16 %v352_v53  ;;  %v491_v57 = vpop.permute.xlu0 %490  ;;  %v351_v58 = vsel %vm2756_vm13, %v328_v45, 0  ;;  %v723_v60 = vpop.permute.xlu1 %722  ;;  %vm2222_vm2 = vcmp.ne.s32.totalorder %v594_v59, %v2149_v31  ;;  %vm2765_vm3 = vmpackc.low %vm2211_vm1, %vm2206_vm0  ;;  %vm2243_vm13 = vcmp.ne.s32.totalorder %v595_v0, %v2152_v32  ;;  %v805_v53 = vld.sshfl [vmem:[#allocation1 + $0x8] sm:$0xff pattern:$0x75316420] }
  0x99   : > { %v492_v61 = vrot.slane %v491_v57, 4  ;;  %v424_v62 = vunpack.c.h.b16 %v351_v58  ;;  %v423_v63 = vunpack.c.l.b16 %v351_v58  ;;  %v724_v4 = vrot.slane %v723_v60, 4  ;;  %891 = vst [vmem:[#allocation1] ss:$2 sm:$0xff] %v2120_v7 }
  0x9a   : > { %v428_v1 = vpack.c.b16 %v425_v56, %v425_v56  ;;  %v2813_v16 = vsel %vm2222_vm2, 4294967295, %v2812_v16  ;;  %v2819_v21 = vsel %vm2243_vm13, 4294967295, %v2818_v21  ;;  %v581_v30 = vpack.c.bf16 %v2154_v36, %v2154_v36  ;;  %v806_v59 = vld.sshfl [vmem:[#allocation1 + $0x10] sm:$0xff pattern:$0x75316420] }
  0x9b   : > { %v494_v5 = vsel %vm2759_vm14, %v492_v61, %v491_v57  ;;  %v502_v6 = vunpack.c.l.b16 %v492_v61  ;;  %v503_v8 = vunpack.c.h.b16 %v492_v61  ;;  %v427_v10 = vpack.c.b16 %v424_v62, %v424_v62 }
  0x9c   : > { %433 = vrot.lane.b32.xlu0 %v428_v1, %s2023_s29  ;;  %v495_v13 = vunpack.c.l.b16 %v494_v5  ;;  %v496_v14 = vunpack.c.h.b16 %v494_v5  ;;  %v426_v15 = vpack.c.b16 %v423_v63, %v423_v63  ;;  %v725_v22 = vsel %vm2761_vm15, %v724_v4, %v723_v60  ;;  %vm2766_vm15 = vmpackc.low %vm2243_vm13, %vm2222_vm2  ;;  %v888_v60 = vld [vmem:[#allocation2 + $0xc] sm:$0xf] }
  0x9d   : > { %431 = vrot.lane.b32.xlu2 %v427_v10, %s2023_s29  ;;  %vm2233_vm4 = vcmp.ne.s32.totalorder %v502_v6, %v2149_v31  ;;  %vm2238_vm5 = vcmp.ne.s32.totalorder %v503_v8, %v2152_v32  ;;  %v814_v33 = vrot.slane %v813_v17, 4  ;;  %v726_v34 = vunpack.c.l.b16 %v725_v22  ;;  %893 = vst [vmem:[#allocation1 + $0x10] ss:$2 sm:$0xff] %v888_v60 }
  0x9e   : > { %vm2249_vm12 = vcmp.ne.s32.totalorder %v495_v13, %v2149_v31  ;;  %vm2254_vm6 = vcmp.ne.s32.totalorder %v496_v14, %v2152_v32  ;;  %429 = vrot.lane.b32.xlu1 %v426_v15, %s2023_s29  ;;  %vm2762_vm14 = vmpackc.low %vm2238_vm5, %vm2233_vm4  ;;  %v727_v35 = vunpack.c.h.b16 %v725_v22  ;;  %v733_v38 = vunpack.c.l.b16 %v724_v4 }
  0x9f   : > { %vm2763_vm7 = vmpackc.low %vm2254_vm6, %vm2249_vm12  ;;  %v510_v29 = vsel %vm2762_vm14, %v487_v55, 0  ;;  %v734_v39 = vunpack.c.h.b16 %v724_v4  ;;  %v601_v40 = vsel %vm2765_vm3, %v580_v26, 0  ;;  %v602_v44 = vsel %vm2766_vm15, %v581_v30, 0 }
  0xa0   : > { %v509_v27 = vsel %vm2763_vm7, %v486_v54, 0  ;;  %v517_v28 = vunpack.c.l.b16 %v510_v29  ;;  %vm2296_vm7 = vcmp.ne.s32.totalorder %v726_v34, %v2149_v31  ;;  %v2824_v45 = vmov 0  ;;  %v895_v14 = vld.sshfl [vmem:[#allocation1 + $0x8] sm:$0xff pattern:$0x75316420] }
  0xa1   : > { %v516_v37 = vunpack.c.h.b16 %v509_v27  ;;  %v2825_v45 = vsel %vm2296_vm7, 4294967295, %v2824_v45  ;;  %vm2301_vm14 = vcmp.ne.s32.totalorder %v727_v35, %v2152_v32  ;;  %vm2828_vm10 = vcmask 121856   ;;  %v894_v15 = vld.sshfl [vmem:[#allocation1] sm:$0xff pattern:$0x75316420] }
  0xa2   : > { %v520_v36 = vpack.c.b16 %v517_v28, %v517_v28  ;;  %v2827_v46 = vsel %vm2301_vm14, 4294967295, %v2826_v46  ;;  %v815_v51 = vsel %vm2828_vm10, %v814_v33, %v813_v17  ;;  %v608_v54 = vunpack.c.h.b16 %v601_v40  ;;  %vm2770_vm10 = vmpackc.low %vm2301_vm14, %vm2296_vm7  ;;  %958 = vst [vmem:[#allocation1] ss:$2 sm:$0xff] %v2120_v7 }
  0xa3   : > { %v519_v43 = vpack.c.b16 %v516_v37, %v516_v37  ;;  %vm2310_vm3 = vcmp.ne.s32.totalorder %v733_v38, %v2149_v31  ;;  %v2829_v55 = vmov 0  ;;  %vm2315_vm15 = vcmp.ne.s32.totalorder %v734_v39, %v2152_v32 }
  0xa4   : > { %v2830_v55 = vsel %vm2310_vm3, 4294967295, %v2829_v55  ;;  %v2831_v56 = vmov 0  ;;  %v515_v57 = vunpack.c.l.b16 %v509_v27  ;;  %v609_v58 = vunpack.c.l.b16 %v602_v44  ;;  %vm2771_vm0 = vmpackc.low %vm2315_vm15, %vm2310_vm3  ;;  %v896_v30 = vld.sshfl [vmem:[#allocation1 + $0x10] sm:$0xff pattern:$0x75316420] }
  0xa5   : > { %969 = vrot.lane.b32.xlu2 %v2128_v9, %s2023_s29  ;;  %523 = vrot.lane.b32.xlu0 %v519_v43, %s2019_s20  ;;  %v2832_v56 = vsel %vm2315_vm15, 4294967295, %v2831_v56  ;;  %v720_v9 = vpack.c.bf16 %v2218_v12, %v2216_v11  ;;  %v721_v61 = vpack.c.bf16 %v716_v18, %v716_v18  ;;  %v816_v62 = vunpack.c.l.b16 %v815_v51  ;;  %v955_v11 = vld [vmem:[#allocation2 + $0xc] sm:$0xf] }
  0xa6   : > { %525 = vrot.lane.b32.xlu1 %v520_v36, %s2019_s20  ;;  %v817_v63 = vunpack.c.h.b16 %v815_v51  ;;  %v611_v0 = vpack.c.b16 %v608_v54, %v608_v54  ;;  %v823_v1 = vunpack.c.l.b16 %v814_v33  ;;  %v824_v4 = vunpack.c.h.b16 %v814_v33  ;;  %960 = vst [vmem:[#allocation1 + $0x10] ss:$2 sm:$0xff] %v955_v11 }
  0xa7   : > { %v518_v5 = vpack.c.b16 %v515_v57, %v515_v57  ;;  %v612_v6 = vpack.c.b16 %v609_v58, %v609_v58  ;;  %v740_v8 = vsel %vm2770_vm10, %v720_v9, 0  ;;  %v741_v10 = vsel %vm2771_vm0, %v721_v61, 0  ;;  %v380_v58 = vpop.permute.xlu0 %379  ;;  %v376_v9 = vpop.permute.xlu1 %375 }
  0xa8   : > { %vm2342_vm1 = vcmp.ne.s32.totalorder %v816_v62, %v2149_v31  ;;  %v2833_v12 = vmov 0  ;;  %vm2347_vm2 = vcmp.ne.s32.totalorder %v817_v63, %v2152_v32  ;;  %v2835_v13 = vmov 0 }
  0xa9   : > { %v2834_v12 = vsel %vm2342_vm1, 4294967295, %v2833_v12  ;;  %v2836_v13 = vsel %vm2347_vm2, 4294967295, %v2835_v13  ;;  %v747_v17 = vunpack.c.h.b16 %v740_v8  ;;  %vm2354_vm10 = vcmp.ne.s32.totalorder %v823_v1, %v2149_v31  ;;  %vm2774_vm7 = vmpackc.low %vm2347_vm2, %vm2342_vm1  ;;  %v1833_v1 = vld [vmem:[%s2749_s1 + $0x4] sm:$0xf] }
  0xaa   : > { %v2837_v18 = vmov 0  ;;  %vm2359_vm0 = vcmp.ne.s32.totalorder %v824_v4, %v2152_v32  ;;  %v2839_v22 = vmov 0  ;;  %v607_v23 = vunpack.c.l.b16 %v601_v40 }
  0xab   : > { %v2838_v18 = vsel %vm2354_vm10, 4294967295, %v2837_v18  ;;  %v2840_v22 = vsel %vm2359_vm0, 4294967295, %v2839_v22  ;;  %v748_v26 = vunpack.c.l.b16 %v741_v10  ;;  %v810_v29 = vpack.c.bf16 %v805_v53, %v804_v52  ;;  %vm2775_vm14 = vmpackc.low %vm2359_vm0, %vm2354_vm10  ;;  %v962_v10 = vld.sshfl [vmem:[#allocation1 + $0x8] sm:$0xff pattern:$0x75316420] }
  0xac   : > { %v811_v33 = vpack.c.bf16 %v806_v59, %v806_v59  ;;  %v750_v27 = vpack.c.b16 %v747_v17, %v747_v17  ;;  %v610_v28 = vpack.c.b16 %v607_v23, %v607_v23  ;;  %v746_v39 = vunpack.c.l.b16 %v740_v8  ;;  %v378_v59 = vpop.permute.xlu2 %377 }
  0xad   : > { %615 = vrot.lane.b32.xlu0 %v611_v0, %s2021_s22  ;;  %521 = vrot.lane.b32.xlu2 %v518_v5, %s2019_s20  ;;  %v751_v34 = vpack.c.b16 %v748_v26, %v748_v26  ;;  %v830_v35 = vsel %vm2774_vm7, %v810_v29, 0  ;;  %v901_v52 = vpack.c.bf16 %v895_v14, %v895_v14  ;;  %v902_v54 = vpack.c.bf16 %v896_v30, %v896_v30  ;;  %v963_v5 = vld.sshfl [vmem:[#allocation1 + $0x10] sm:$0xff pattern:$0x75316420] }
  0xae   : > { %617 = vrot.lane.b32.xlu1 %v612_v6, %s2021_s22  ;;  %v831_v37 = vsel %vm2775_vm14, %v811_v33, 0  ;;  %v837_v38 = vunpack.c.h.b16 %v830_v35  ;;  %v749_v43 = vpack.c.b16 %v746_v39, %v746_v39  ;;  %v836_v51 = vunpack.c.l.b16 %v830_v35  ;;  %v961_v6 = vld.sshfl [vmem:[#allocation1] sm:$0xff pattern:$0x75316420] }
  0xaf   : > { %v838_v36 = vunpack.c.l.b16 %v831_v37  ;;  %v900_v57 = vpack.c.bf16 %v894_v15, %v894_v15  ;;  %vm2778_vm7 = vcmask 130048   ;;  %vm2780_vm14 = vcmask 1041408  }
  0xb0   : > { %v840_v40 = vpack.c.b16 %v837_v38, %v837_v38  ;;  %v839_v53 = vpack.c.b16 %v836_v51, %v836_v51  ;;  %v382_v60 = vsel %vm2778_vm7, %v376_v9, %v378_v59  ;;  %v383_v61 = vsel %vm2778_vm7, %v378_v59, %v380_v58 }
  0xb1   : > { %v841_v44 = vpack.c.b16 %v838_v36, %v838_v36  ;;  %v390_v62 = vsel %vm2780_vm14, %v382_v60, 0  ;;  %v393_v63 = vsel %vm2780_vm14, %v383_v61, 0  ;;  %vm2779_vm1 = vcmask 31744  }
  0xb2   : > { %402 = vmatpush.bf16.msra.mxu0 %v390_v62  ;;  %415 = vmatpush.bf16.msra.mxu1 %v393_v63  ;;  %vm2781_vm2 = vcmask 138240   ;;  %v968_v17 = vpack.c.bf16 %v963_v5, %v963_v5  ;;  %v967_v29 = vpack.c.bf16 %v962_v10, %v961_v6  ;;  %v2841_v30 = vmov 0 }
  0xb3   : > { %v2843_v33 = vmov 0  ;;  %v667_v58 = vpack.c.bf16 %v2160_v42, %v2160_v42  ;;  %v666_v9 = vpack.c.bf16 %v2158_v41, %v2158_v41  ;;  %v1838_v41 = vld [vmem:[%s2749_s1 + $0x8] sm:$0xf]  ;;  %vm1109_vm13 = vcmask 1043456  }
  0xb5   : > { %754 = vrot.lane.b32.xlu0 %v750_v27, %s2018_s19  ;;  %613 = vrot.lane.b32.xlu2 %v610_v28, %s2021_s22  ;;  %v2845_v27 = vmov 0  ;;  %v2847_v28 = vmov 0 }
  0xb6   : > { %756 = vrot.lane.b32.xlu1 %v751_v34, %s2018_s19  ;;  %1835 = vmatmul.msk.bf16.vlgmr.msra.gmra.mxu1 %vm2779_vm1, %v1833_v1 }
  0xb7   : > { %1834 = vmatmul.msk.bf16.vlgmr.msra.gmra.mxu0 %vm2779_vm1, %v1833_v1 }
  0xbd   : > { %844 = vrot.lane.b32.xlu0 %v840_v40, %s2020_s21  ;;  %752 = vrot.lane.b32.xlu2 %v749_v43, %s2018_s19 }
  0xbe   : > { %846 = vrot.lane.b32.xlu1 %v841_v44, %s2020_s21 }
  0xc5   : > { %910 = vrot.lane.b32.xlu0 %v901_v52, %s2791_s8  ;;  %842 = vrot.lane.b32.xlu2 %v839_v53, %s2020_s21 }
  0xc6   : > { %912 = vrot.lane.b32.xlu1 %v902_v54, %s2791_s8  ;;  %v353_v54 = vld [vmem:[%s2749_s1] sm:$0xf] }
  0xcd   : > { %908 = vrot.lane.b32.xlu2 %v900_v57, %s2791_s8 }
  0xf7   : > { %v432_v0 = vpop.permute.xlu2 %431 }
  0xff   : > { %v970_v4 = vpop.permute.xlu2 %969 }
 0x100   : > { %v971_v8 = vrot.slane %v970_v4, 4 }
 0x102   : > { %v972_v11 = vsel %vm2781_vm2, %v971_v8, %v970_v4  ;;  %v980_v14 = vunpack.c.l.b16 %v971_v8  ;;  %v981_v15 = vunpack.c.h.b16 %v971_v8 }
 0x103   : > { %v973_v23 = vunpack.c.l.b16 %v972_v11  ;;  %v974_v26 = vunpack.c.h.b16 %v972_v11 }
 0x104   : > { %vm2404_vm7 = vcmp.ne.s32.totalorder %v980_v14, %v2149_v31  ;;  %vm2409_vm1 = vcmp.ne.s32.totalorder %v981_v15, %v2152_v32 }
 0x105   : > { %v2842_v30 = vsel %vm2404_vm7, 4294967295, %v2841_v30  ;;  %v2844_v33 = vsel %vm2409_vm1, 4294967295, %v2843_v33  ;;  %vm2414_vm14 = vcmp.ne.s32.totalorder %v973_v23, %v2149_v31  ;;  %vm2419_vm2 = vcmp.ne.s32.totalorder %v974_v26, %v2152_v32  ;;  %vm2784_vm3 = vmpackc.low %vm2409_vm1, %vm2404_vm7 }
 0x106   : > { %v2846_v27 = vsel %vm2414_vm14, 4294967295, %v2845_v27  ;;  %v2848_v28 = vsel %vm2419_vm2, 4294967295, %v2847_v28  ;;  %vm2786_vm15 = vmpackc.low %vm2419_vm2, %vm2414_vm14  ;;  %v988_v31 = vsel %vm2784_vm3, %v968_v17, 0  ;;  %vm2849_vm3 = vcmask 138240   ;;  %v1841_v17 = vld [vmem:[%s2749_s1 + $0xc] sm:$0xf] }
 0x107   : > { %v995_v32 = vunpack.c.l.b16 %v988_v31  ;;  %v987_v34 = vsel %vm2786_vm15, %v967_v29, 0  ;;  %v522_v44 = vpop.permute.xlu2 %521  ;;  %vm2850_vm7 = vcmask 1041408   ;;  %vm2851_vm15 = vmmov %vm2849_vm3  ;;  %vm2853_vm2 = vcmask 31744  }
 0x108   : > { %v994_v35 = vunpack.c.h.b16 %v987_v34  ;;  %v993_v37 = vunpack.c.l.b16 %v987_v34  ;;  %vm2852_vm14 = vmmov %vm2850_vm7 }
 0x109   : > { %v998_v38 = vpack.c.b16 %v995_v32, %v995_v32  ;;  %vm2854_vm1 = vmmov %vm2853_vm2 }
 0x10a   : > { %v997_v39 = vpack.c.b16 %v994_v35, %v994_v35  ;;  %v996_v36 = vpack.c.b16 %v993_v37, %v993_v37  ;;  %v1844_v37 = vld [vmem:[%s2749_s1 + $0x10] sm:$0xf] }
 0x10b   : > { %1003 = vrot.lane.b32.xlu1 %v998_v38, %s2793_s18 }
 0x10c   : > { %1001 = vrot.lane.b32.xlu0 %v997_v39, %s2793_s18  ;;  %999 = vrot.lane.b32.xlu2 %v996_v36, %s2793_s18  ;;  %s1891_s18 = sshll.u32 %s2086_s28, 3 }
 0x10e   : > { %v434_v40 = vpop.permute.xlu0 %433 }
 0x10f   : > { %v437_v43 = vsel %vm2849_vm3, %v432_v0, %v434_v40  ;;  %v614_v63 = vpop.permute.xlu2 %613 }
 0x110   : > { %v430_v51 = vpop.permute.xlu1 %429  ;;  %v445_v52 = vsel %vm2850_vm7, %v437_v43, 0  ;;  %vm2855_vm7 = vcmask 121856  }
 0x111   : > { %467 = vmatpush.bf16.msra.mxu3 %v445_v52  ;;  %v436_v53 = vsel %vm2851_vm15, %v430_v51, %v432_v0  ;;  %vm2856_vm15 = vmmov %vm2852_vm14  ;;  %v1847_v51 = vld [vmem:[%s2749_s1 + $0x14] sm:$0xf] }
 0x112   : > { %v442_v57 = vsel %vm2852_vm14, %v436_v53, 0  ;;  %v674_v62 = vsel %vm2856_vm15, %v666_v9, 0  ;;  %vm2857_vm3 = vmmov %vm2855_vm7 }
 0x113   : > { %454 = vmatpush.bf16.msra.mxu2 %v442_v57 }
 0x114   : > { %1837 = vmatmul.msk.bf16.vlgmr.msra.gmra.mxu3 %vm2853_vm2, %v353_v54  ;;  %vm2858_vm2 = vmmov %vm2852_vm14 }
 0x115   : > { %v677_v4 = vsel %vm2858_vm2, %v667_v58, 0 }
 0x116   : > { %1836 = vmatmul.msk.bf16.vlgmr.msra.gmra.mxu2 %vm2854_vm1, %v353_v54  ;;  %vm2859_vm1 = vmmov %vm2858_vm2 }
 0x117   : > { %v524_v59 = vpop.permute.xlu0 %523  ;;  %vm2864_vm2 = vmmov %vm2859_vm1  ;;  %v753_v14 = vpop.permute.xlu2 %752 }
 0x118   : > { %v526_v60 = vpop.permute.xlu1 %525  ;;  %v528_v61 = vsel %vm2855_vm7, %v522_v44, %v524_v59  ;;  %vm2860_vm7 = vcmask 31744   ;;  %vm2869_vm10 = vmmov %vm2859_vm1 }
 0x119   : > { %v529_v0 = vsel %vm2857_vm3, %v524_v59, %v526_v60  ;;  %v534_v1 = vsel %vm2852_vm14, %v528_v61, 0  ;;  %vm2861_vm15 = vmmov %vm2860_vm7  ;;  %vm2862_vm3 = vcmask 7168   ;;  %v1850_v60 = vld [vmem:[%s2749_s1 + $0x18] sm:$0xf]  ;;  %v1853_v61 = vld [vmem:[%s2749_s1 + $0x1c] sm:$0xf] }
 0x11a   : > { %v537_v5 = vsel %vm2859_vm1, %v529_v0, 0  ;;  %546 = vmatpush.bf16.msrb.mxu0 %v534_v1  ;;  %vm2863_vm14 = vmmov %vm2862_vm3 }
 0x11b   : > { %559 = vmatpush.bf16.msrb.mxu1 %v537_v5 }
 0x11d   : > { %1839 = vmatmul.msk.bf16.vlgmr.msrb.gmra.mxu0 %vm2860_vm7, %v1838_v41 }
 0x11e   : > { %686 = vmatpush.bf16.msra.mxu0 %v674_v62  ;;  %1840 = vmatmul.msk.bf16.vlgmr.msrb.gmra.mxu1 %vm2861_vm15, %v1838_v41  ;;  %vm2865_vm15 = vmmov %vm2860_vm7  ;;  %v1044_v62 = vld [vmem:[%s2750_s2] sm:$0xff] }
 0x11f   : > { %699 = vmatpush.bf16.msra.mxu1 %v677_v4  ;;  %v616_v42 = vpop.permute.xlu0 %615  ;;  %v843_v35 = vpop.permute.xlu2 %842  ;;  %1047 = vperm.xlu0 %1941, %v1044_v62  }
 0x120   : > { %v618_v6 = vpop.permute.xlu1 %617  ;;  %v620_v8 = vsel %vm2862_vm3, %v614_v63, %v616_v42  ;;  %vm2866_vm3 = vcmask 1039360   ;;  %v1052_v63 = vld [vmem:[%s2751_s3] sm:$0xff] }
 0x121   : > { %v621_v10 = vsel %vm2863_vm14, %v616_v42, %v618_v6  ;;  %v626_v11 = vsel %vm2864_vm2, %v620_v8, 0  ;;  %vm2867_vm14 = vmmov %vm2866_vm3  ;;  %1055 = vperm.xlu1 %1942, %v1052_v63  }
 0x122   : > { %v629_v15 = vsel %vm2859_vm1, %v621_v10, 0  ;;  %638 = vmatpush.bf16.msrb.mxu2 %v626_v11  ;;  %vm2868_vm2 = vmmov %vm2859_vm1 }
 0x123   : > { %651 = vmatpush.bf16.msrb.mxu3 %v629_v15  ;;  %vm2870_vm1 = vmmov %vm2860_vm7  ;;  %v1856_v15 = vld [vmem:[%s2749_s1 + $0x20] sm:$0xf] }
 0x126   : > { %1843 = vmatmul.msk.bf16.vlgmr.msrb.gmra.mxu3 %vm2860_vm7, %v1841_v17  ;;  %1842 = vmatmul.msk.bf16.vlgmr.msrb.gmra.mxu2 %vm2865_vm15, %v1841_v17  ;;  %vm2871_vm7 = vmmov %vm2870_vm1  ;;  %vm2872_vm15 = vcmask 924672  }
 0x127   : > { %v755_v23 = vpop.permute.xlu0 %754  ;;  %v909_v52 = vpop.permute.xlu2 %908 }
 0x128   : > { %v757_v26 = vpop.permute.xlu1 %756  ;;  %v758_v29 = vsel %vm2866_vm3, %v753_v14, %v755_v23  ;;  %vm2873_vm3 = vmmov %vm2872_vm15 }
 0x129   : > { %v759_v31 = vsel %vm2867_vm14, %v755_v23, %v757_v26  ;;  %v764_v32 = vsel %vm2868_vm2, %v758_v29, 0  ;;  %vm2874_vm14 = vmmov %vm2868_vm2 }
 0x12a   : > { %v767_v34 = vsel %vm2869_vm10, %v759_v31, 0  ;;  %776 = vmatpush.bf16.msra.mxu2 %v764_v32  ;;  %vm2875_vm10 = vmmov %vm2868_vm2 }
 0x12b   : > { %789 = vmatpush.bf16.msra.mxu3 %v767_v34  ;;  %vm2876_vm2 = vmmov %vm2870_vm1 }
 0x12d   : > { %1845 = vmatmul.msk.bf16.vlgmr.msra.gmra.mxu0 %vm2870_vm1, %v1844_v37 }
 0x12e   : > { %1846 = vmatmul.msk.bf16.vlgmr.msra.gmra.mxu1 %vm2871_vm7, %v1844_v37  ;;  %vm2795_vm7 = vcmask 916480  }
 0x12f   : > { %v845_v38 = vpop.permute.xlu0 %844 }
 0x130   : > { %v847_v39 = vpop.permute.xlu1 %846  ;;  %v848_v36 = vsel %vm2872_vm15, %v843_v35, %v845_v38  ;;  %vm2877_vm15 = vmmov %vm2875_vm10 }
 0x131   : > { %v849_v40 = vsel %vm2873_vm3, %v845_v38, %v847_v39  ;;  %v854_v43 = vsel %vm2874_vm14, %v848_v36, 0  ;;  %vm2878_vm3 = vmmov %vm2875_vm10 }
 0x132   : > { %v857_v44 = vsel %vm2875_vm10, %v849_v40, 0  ;;  %866 = vmatpush.bf16.msrb.mxu0 %v854_v43  ;;  %vm2879_vm14 = vmmov %vm2870_vm1 }
 0x133   : > { %879 = vmatpush.bf16.msrb.mxu1 %v857_v44  ;;  %vm2880_vm10 = vmmov %vm2870_vm1  ;;  %v417_v0 = vpop.f32.mrf.mxu1 }
 0x134   : > { %v404_v1 = vpop.f32.mrf.mxu0 }
 0x136   : > { %1849 = vmatmul.msk.bf16.vlgmr.msra.gmra.mxu3 %vm2876_vm2, %v1847_v51  ;;  %1848 = vmatmul.msk.bf16.vlgmr.msra.gmra.mxu2 %vm2870_vm1, %v1847_v51  ;;  %vm2881_vm2 = vmmov %vm2870_vm1 }
 0x137   : > { %v911_v53 = vpop.permute.xlu0 %910 }
 0x138   : > { %v913_v54 = vpop.permute.xlu1 %912  ;;  %v915_v57 = vsel %vm2795_vm7, %v909_v52, %v911_v53 }
 0x139   : > { %v916_v58 = vsel %vm2795_vm7, %v911_v53, %v913_v54  ;;  %v921_v9 = vsel %vm2877_vm15, %v915_v57, 0  ;;  %vm2882_vm15 = vcmask 908288  }
 0x13a   : > { %v924_v59 = vsel %vm2878_vm3, %v916_v58, 0  ;;  %933 = vmatpush.bf16.msrb.mxu2 %v921_v9  ;;  %vm2883_vm3 = vmmov %vm2882_vm15 }
 0x13b   : > { %946 = vmatpush.bf16.msrb.mxu3 %v924_v59  ;;  %v419_v42 = vpop.f32.mrf.mxu1 }
 0x13c   : > { %v406_v10 = vpop.f32.mrf.mxu0 }
 0x13d   : > { %1851 = vmatmul.msk.bf16.vlgmr.msrb.gmra.mxu0 %vm2879_vm14, %v1850_v60  ;;  %vm2884_vm14 = vcmask 1041408  }
 0x13e   : > { %1852 = vmatmul.msk.bf16.vlgmr.msrb.gmra.mxu1 %vm2880_vm10, %v1850_v60  ;;  %vm2885_vm10 = vmmov %vm2884_vm14 }
 0x146   : > { %1855 = vmatmul.msk.bf16.vlgmr.msrb.gmra.mxu3 %vm2881_vm2, %v1853_v61  ;;  %1854 = vmatmul.msk.bf16.vlgmr.msrb.gmra.mxu2 %vm2870_vm1, %v1853_v61  ;;  %vm2886_vm2 = vmmov %vm2870_vm1 }
 0x166   : > { %v1000_v4 = vpop.permute.xlu2 %999 }
 0x17d   : > { %v1004_v5 = vpop.permute.xlu1 %1003 }
 0x17e   : > { %v1002_v41 = vpop.permute.xlu0 %1001 }
 0x17f   : > { %v1005_v6 = vsel %vm2882_vm15, %v1000_v4, %v1002_v41  ;;  %v1006_v8 = vsel %vm2883_vm3, %v1002_v41, %v1004_v5 }
 0x180   : > { %v1011_v11 = vsel %vm2884_vm14, %v1005_v6, 0  ;;  %v1014_v14 = vsel %vm2885_vm10, %v1006_v8, 0 }
 0x181   : > { %1023 = vmatpush.bf16.msra.mxu0 %v1011_v11  ;;  %1036 = vmatpush.bf16.msra.mxu1 %v1014_v14 }
 0x184   : > { %1857 = vmatmul.msk.bf16.vlgmr.msra.gmra.mxu0 %vm2886_vm2, %v1856_v15  ;;  %1858 = vmatmul.msk.bf16.vlgmr.msra.gmra.mxu1 %vm2870_vm1, %v1856_v15 }
 0x197   : > { %v469_v17 = vpop.f32.mrf.mxu3 }
 0x198   : > { %v470_v23 = vadd.f32 %v469_v17, %v417_v0 }
 0x199   : > { %v456_v26 = vpop.f32.mrf.mxu2 }
 0x19a   : > { %v457_v29 = vadd.f32 %v456_v26, %v404_v1  ;;  %v548_v31 = vpop.f32.mrf.mxu0 }
 0x19b   : > { %v561_v32 = vpop.f32.mrf.mxu1 }
 0x19c   : > { %v566_v34 = vadd.f32 %v561_v32, %v470_v23  ;;  %v565_v35 = vadd.f32 %v548_v31, %v457_v29  ;;  %v1048_v29 = vpop.permute.xlu0 %1047 }
 0x19f   : > { %v471_v37 = vpop.f32.mrf.mxu3 }
 0x1a0   : > { %v1056_v37 = vpop.permute.xlu1 %1055 }
 0x1a1   : > { %v458_v38 = vpop.f32.mrf.mxu2 }
 0x1a2   : > { %v550_v39 = vpop.f32.mrf.mxu0 }
 0x1a3   : > { %v563_v36 = vpop.f32.mrf.mxu1 }
 0x1a9   : > { %v653_v40 = vpop.f32.mrf.mxu3  ;;  %v640_v43 = vpop.f32.mrf.mxu2 }
 0x1aa   : > { %v658_v44 = vadd.f32 %v653_v40, %v566_v34  ;;  %v657_v51 = vadd.f32 %v640_v43, %v565_v35  ;;  %v688_v52 = vpop.f32.mrf.mxu0 }
 0x1ab   : > { %v701_v53 = vpop.f32.mrf.mxu1 }
 0x1ac   : > { %v706_v54 = vadd.f32 %v701_v53, %v658_v44  ;;  %v705_v57 = vadd.f32 %v688_v52, %v657_v51 }
 0x1b1   : > { %v655_v58 = vpop.f32.mrf.mxu3  ;;  %v642_v9 = vpop.f32.mrf.mxu2 }
 0x1b2   : > { %v690_v59 = vpop.f32.mrf.mxu0 }
 0x1b3   : > { %v703_v60 = vpop.f32.mrf.mxu1 }
 0x1b9   : > { %v791_v61 = vpop.f32.mrf.mxu3  ;;  %v778_v62 = vpop.f32.mrf.mxu2 }
 0x1ba   : > { %v796_v63 = vadd.f32 %v791_v61, %v706_v54  ;;  %v795_v0 = vadd.f32 %v778_v62, %v705_v57  ;;  %v868_v1 = vpop.f32.mrf.mxu0 }
 0x1bb   : > { %v881_v4 = vpop.f32.mrf.mxu1 }
 0x1bc   : > { %v886_v5 = vadd.f32 %v881_v4, %v796_v63  ;;  %v885_v41 = vadd.f32 %v868_v1, %v795_v0 }
 0x1c1   : > { %v793_v42 = vpop.f32.mrf.mxu3  ;;  %v780_v6 = vpop.f32.mrf.mxu2 }
 0x1c2   : > { %v870_v8 = vpop.f32.mrf.mxu0 }
 0x1c3   : > { %v883_v10 = vpop.f32.mrf.mxu1 }
 0x1c9   : > { %v948_v11 = vpop.f32.mrf.mxu3  ;;  %v935_v14 = vpop.f32.mrf.mxu2 }
 0x1ca   : > { %v953_v23 = vadd.f32 %v948_v11, %v886_v5  ;;  %v952_v26 = vadd.f32 %v935_v14, %v885_v41 }
 0x1d1   : > { %v950_v15 = vpop.f32.mrf.mxu3  ;;  %v937_v17 = vpop.f32.mrf.mxu2 }
 0x201   : > { %v1025_v31 = vpop.f32.mrf.mxu0  ;;  %v1038_v32 = vpop.f32.mrf.mxu1 }
 0x202   : > { %v1042_v34 = vadd.f32 %v1025_v31, %v952_v26  ;;  %v1043_v35 = vadd.f32 %v1038_v32, %v953_v23 }
 0x204   : > { %v1050_v38 = vmul.f32 %v1048_v29, %v1042_v34  ;;  %v1051_v39 = vmul.f32 %v1048_v29, %v1043_v35 }
 0x206   : > { %v1058_v36 = vadd.f32 %v1056_v37, %v1050_v38  ;;  %v1059_v40 = vadd.f32 %v1056_v37, %v1051_v39 }
 0x208   : > { %v1060_v43 = vsub.f32 0.0, %v1058_v36  ;;  %v1061_v44 = vsub.f32 0.0, %v1059_v40 }
 0x209   : > { %v1027_v51 = vpop.f32.mrf.mxu0  ;;  %v1040_v52 = vpop.f32.mrf.mxu1 }
 0x20a   : > { %v1062_v53 = vmul.f32 1.442695, %v1060_v43  ;;  %v1064_v54 = vmul.f32 1.442695, %v1061_v44 }
 0x20c   : > { %1943 = vpow2.f32 %v1062_v53 }
 0x20d   : > { %1945 = vpow2.f32 %v1064_v54 }
 0x212   : > { %v1944_v57 = vpop.eup %1943 }
 0x213   : > { %v1946_v58 = vpop.eup %1945  ;;  %v1066_v9 = vadd.f32 1.0, %v1944_v57 }
 0x214   : > { %v1067_v59 = vadd.f32 1.0, %v1946_v58 }
 0x215   : > { %1947 = vrcp.f32 %v1066_v9  ;;  %v1079_v1 = vand.u32 2147483648, %v1066_v9  ;;  %v1077_v41 = vand.u32 2147483647, %v1066_v9  ;;  %vm1073_vm14 = vweird.f32 %v1066_v9 }
 0x216   : > { %1949 = vrcp.f32 %v1067_v59  ;;  %v1094_v42 = vand.u32 2147483648, %v1067_v59  ;;  %v1092_v8 = vand.u32 2147483647, %v1067_v59  ;;  %vm1088_vm2 = vweird.f32 %v1067_v59 }
 0x217   : > { %v1080_v11 = vor.u32 1.1754944e-38, %v1079_v1  ;;  %vm1078_vm1 = vcmp.eq.f32.partialorder %v1077_v41, 8.507059e+37 }
 0x218   : > { %v1095_v17 = vor.u32 1.1754944e-38, %v1094_v42  ;;  %vm1093_vm0 = vcmp.eq.f32.partialorder %v1092_v8, 8.507059e+37 }
 0x21b   : > { %v1948_v60 = vpop.eup %1947 }
 0x21c   : > { %v1950_v61 = vpop.eup %1949  ;;  %v1069_v62 = vmul.f32 %v1948_v60, %v1066_v9  ;;  %vm1074_vm15 = vweird.f32 %v1948_v60 }
 0x21d   : > { %v1084_v63 = vmul.f32 %v1950_v61, %v1067_v59  ;;  %vm1089_vm3 = vweird.f32 %v1950_v61  ;;  %vm1075_vm10 = vmor %vm1073_vm14, %vm1074_vm15  ;;  %vm2898_vm14 = vnez %v2840_v22 }
 0x21e   : > { %v1070_v0 = vsub.f32 1.0, %v1069_v62  ;;  %vm1090_vm7 = vmor %vm1088_vm2, %vm1089_vm3 }
 0x21f   : > { %v1085_v4 = vsub.f32 1.0, %v1084_v63  ;;  %vm2889_vm15 = vmpackc.low %vm2169_vm9, %vm2164_vm8  ;;  %vm2892_vm8 = vnez %v2819_v21  ;;  %vm2893_vm9 = vnez %v2813_v16 }
 0x220   : > { %v1071_v5 = vmul.f32 %v1948_v60, %v1070_v0 }
 0x221   : > { %v1086_v6 = vmul.f32 %v1950_v61, %v1085_v4 }
 0x222   : > { %v1072_v10 = vadd.f32 %v1948_v60, %v1071_v5 }
 0x223   : > { %v1087_v14 = vadd.f32 %v1950_v61, %v1086_v6 }
 0x224   : > { %v1076_v15 = vsel %vm1075_vm10, %v1948_v60, %v1072_v10  ;;  %vm2899_vm10 = vnez %v2838_v18 }
 0x225   : > { %v1081_v23 = vsel %vm1078_vm1, %v1080_v11, %v1076_v15  ;;  %v1091_v26 = vsel %vm1090_vm7, %v1950_v61, %v1087_v14  ;;  %vm2888_vm7 = vmpackc.low %vm2238_vm5, %vm2233_vm4  ;;  %vm2895_vm4 = vnez %v2811_v3  ;;  %vm2896_vm5 = vnez %v2809_v2 }
 0x226   : > { %v1096_v29 = vsel %vm1093_vm0, %v1095_v17, %v1091_v26  ;;  %v1100_v31 = vrot.slane %v1081_v23, 4  ;;  %vm2887_vm0 = vmpackc.low %vm2254_vm6, %vm2249_vm12  ;;  %vm2890_vm6 = vnez %v2805_v49  ;;  %vm2901_vm1 = vnez %v2832_v56 }
 0x227   : > { %v1101_v32 = vrot.slane %v1096_v29, 4  ;;  %vm2891_vm12 = vmpackc.low %vm2179_vm11, %vm2890_vm6  ;;  %vm2905_vm6 = vnez %v2834_v12 }
 0x228   : > { %v1104_v35 = vmul.f32 %v1100_v31, %v1058_v36  ;;  %vm2894_vm11 = vmpackc.low %vm2892_vm8, %vm2893_vm9  ;;  %vm2907_vm8 = vnez %v2827_v46  ;;  %vm2908_vm9 = vnez %v2825_v45 }
 0x229   : > { %v1105_v34 = vmul.f32 %v1101_v32, %v1059_v40  ;;  %vm2897_vm3 = vmpackc.low %vm2895_vm4, %vm2896_vm5  ;;  %vm2910_vm4 = vnez %v2844_v33  ;;  %vm2911_vm5 = vnez %v2842_v30 }
 0x22a   : > { %vm2900_vm2 = vmpackc.low %vm2898_vm14, %vm2899_vm10  ;;  %vm2914_vm14 = vnez %v2848_v28  ;;  %vm2915_vm10 = vnez %v2846_v27  ;;  %v1720_v27 = vld [vmem:[%s2753_s5] sm:$0xf] }
 0x22b   : > { %v1108_v37 = vrot.slane %v1105_v34, 4 }
 0x22d   : > { %v2525_v38 = vsel %vm1109_vm13, %v1104_v35, %v1108_v37  ;;  %v1511_v35 = vld [vmem:[#allocation2 + $0xc] sm:$0xf] }
 0x22e   : > { %1112 = vst [vmem:[#allocation2 + $0x4] sm:$0xff] %v2525_v38 }
 0x235   : > { %v1113_v39 = vld [vmem:[#allocation2] sm:$0xff]  ;;  %v1114_v43 = vld [vmem:[#allocation2 + $0x8] sm:$0xf] }
 0x236   : > { %1117 = vst [vmem:[#allocation1] ss:$2 sm:$0xff] %v1113_v39  ;;  %v1132_v44 = vld [vmem:[#allocation2 + $0x8] sm:$0xf] }
 0x237   : > { %1119 = vst [vmem:[#allocation1 + $0x10] ss:$2 sm:$0xff] %v1114_v43  ;;  %v1247_v54 = vld [vmem:[#allocation2 + $0x8] sm:$0xf] }
 0x238   : > { %v1319_v59 = vld [vmem:[#allocation2 + $0x8] sm:$0xf] }
 0x23d   : > { %v1120_v51 = vld.sshfl [vmem:[#allocation1] sm:$0xff pattern:$0x75316420]  ;;  %v1121_v52 = vld.sshfl [vmem:[#allocation1 + $0x8] sm:$0xff pattern:$0x75316420] }
 0x23e   : > { %v1122_v53 = vld.sshfl [vmem:[#allocation1 + $0x10] sm:$0xff pattern:$0x75316420]  ;;  %1135 = vst [vmem:[#allocation1] ss:$2 sm:$0xff] %v1113_v39  ;;  %v1126_v41 = vpack.c.bf16 %v1121_v52, %v1120_v51 }
 0x23f   : > { %1137 = vst [vmem:[#allocation1 + $0x10] ss:$2 sm:$0xff] %v1132_v44  ;;  %v1127_v5 = vpack.c.bf16 %v1122_v53, %v1122_v53  ;;  %v1583_v52 = vld [vmem:[#allocation2 + $0xc] sm:$0xf] }
 0x240   : > { %v1128_v20 = vsel %vm2891_vm12, %v1126_v41, 0 }
 0x241   : > { %v1129_v24 = vsel %vm2889_vm15, %v1127_v5, 0  ;;  %v1198_v47 = vunpack.c.h.b16 %v1128_v20  ;;  %v1197_v26 = vunpack.c.l.b16 %v1128_v20  ;;  %vm2904_vm15 = vnez %v2836_v13 }
 0x242   : > { %v1199_v48 = vunpack.c.l.b16 %v1129_v24  ;;  %vm2906_vm12 = vmpackc.low %vm2904_vm15, %vm2905_vm6 }
 0x243   : > { %v1201_v29 = vpack.c.b16 %v1198_v47, %v1198_v47  ;;  %v1200_v21 = vpack.c.b16 %v1197_v26, %v1197_v26 }
 0x244   : > { %v1202_v31 = vpack.c.b16 %v1199_v48, %v1199_v48 }
 0x245   : > { %v1139_v40 = vld.sshfl [vmem:[#allocation1 + $0x8] sm:$0xff pattern:$0x75316420]  ;;  %v1138_v57 = vld.sshfl [vmem:[#allocation1] sm:$0xff pattern:$0x75316420] }
 0x246   : > { %v1140_v36 = vld.sshfl [vmem:[#allocation1 + $0x10] sm:$0xff pattern:$0x75316420]  ;;  %v1145_v58 = vpack.c.bf16 %v1139_v40, %v1139_v40  ;;  %1250 = vst [vmem:[#allocation1] ss:$2 sm:$0xff] %v1113_v39  ;;  %v1144_v62 = vpack.c.bf16 %v1138_v57, %v1138_v57 }
 0x247   : > { %v1146_v9 = vpack.c.bf16 %v1140_v36, %v1140_v36  ;;  %1252 = vst [vmem:[#allocation1 + $0x10] ss:$2 sm:$0xff] %v1247_v54 }
 0x248   : > { %1154 = vrot.lane.b32.xlu2 %v1145_v58, %s2022_s23 }
 0x249   : > { %1156 = vrot.lane.b32.xlu1 %v1146_v9, %s2022_s23 }
 0x24d   : > { %v1253_v60 = vld.sshfl [vmem:[#allocation1] sm:$0xff pattern:$0x75316420]  ;;  %v1254_v61 = vld.sshfl [vmem:[#allocation1 + $0x8] sm:$0xff pattern:$0x75316420] }
 0x24e   : > { %v1255_v63 = vld.sshfl [vmem:[#allocation1 + $0x10] sm:$0xff pattern:$0x75316420]  ;;  %v1259_v0 = vpack.c.bf16 %v1254_v61, %v1253_v60  ;;  %1322 = vst [vmem:[#allocation1] ss:$2 sm:$0xff] %v1113_v39 }
 0x24f   : > { %v1260_v1 = vpack.c.bf16 %v1255_v63, %v1255_v63  ;;  %1324 = vst [vmem:[#allocation1 + $0x10] ss:$2 sm:$0xff] %v1319_v59 }
 0x250   : > { %1152 = vrot.lane.b32.xlu2 %v1144_v62, %s2022_s23  ;;  %v1261_v4 = vsel %vm2887_vm0, %v1259_v0, 0  ;;  %vm2902_vm0 = vnez %v2830_v55  ;;  %v1649_v62 = vld [vmem:[#allocation2 + $0xc] sm:$0xf]  ;;  %s1751_s23 = scalar_lea.sflag [#allocation4], %s269_s16 }
 0x251   : > { %v1262_v42 = vsel %vm2888_vm7, %v1260_v1, 0  ;;  %v1268_v6 = vunpack.c.h.b16 %v1261_v4  ;;  %v1267_v10 = vunpack.c.l.b16 %v1261_v4  ;;  %vm2903_vm7 = vmpackc.low %vm2901_vm1, %vm2902_vm0  ;;  %vm2918_vm1 = vcmask 130048  }
 0x252   : > { %v1269_v8 = vunpack.c.l.b16 %v1262_v42  ;;  %vm2919_vm0 = vcmask 1041408   ;;  %vm2921_vm15 = vmmov %vm2918_vm1 }
 0x253   : > { %v1271_v11 = vpack.c.b16 %v1268_v6, %v1268_v6  ;;  %v1270_v17 = vpack.c.b16 %v1267_v10, %v1267_v10  ;;  %vm2922_vm6 = vmmov %vm2919_vm0 }
 0x254   : > { %v1272_v14 = vpack.c.b16 %v1269_v8, %v1269_v8 }
 0x255   : > { %1275 = vrot.lane.b32.xlu0 %v1271_v11, %s2019_s20  ;;  %v1325_v25 = vld.sshfl [vmem:[#allocation1] sm:$0xff pattern:$0x75316420]  ;;  %v1326_v15 = vld.sshfl [vmem:[#allocation1 + $0x8] sm:$0xff pattern:$0x75316420] }
 0x256   : > { %1277 = vrot.lane.b32.xlu1 %v1272_v14, %s2019_s20  ;;  %v1327_v23 = vld.sshfl [vmem:[#allocation1 + $0x10] sm:$0xff pattern:$0x75316420]  ;;  %1392 = vst [vmem:[#allocation1] ss:$2 sm:$0xff] %v2525_v38  ;;  %v1331_v49 = vpack.c.bf16 %v1326_v15, %v1325_v25 }
 0x257   : > { %1444 = vst [vmem:[#allocation1 + $0x10] ss:$2 sm:$0xff] %v1439_v19  ;;  %v1332_v50 = vpack.c.bf16 %v1327_v23, %v1327_v23 }
 0x258   : > { %1273 = vrot.lane.b32.xlu2 %v1270_v17, %s2019_s20  ;;  %v1333_v34 = vsel %vm2897_vm3, %v1331_v49, 0  ;;  %vm2912_vm3 = vmpackc.low %vm2910_vm4, %vm2911_vm5  ;;  %s2913_s20 = smov 111  }
 0x259   : > { %v1334_v32 = vsel %vm2894_vm11, %v1332_v50, 0  ;;  %v1340_v16 = vunpack.c.h.b16 %v1333_v34  ;;  %v1339_v3 = vunpack.c.l.b16 %v1333_v34  ;;  %vm2909_vm11 = vmpackc.low %vm2907_vm8, %vm2908_vm9  ;;  %v1859_v34 = vld [vmem:[%s2752_s4 + $0x2] sm:$0x3]  ;;  %vm2924_vm8 = vcmask 121856  }
 0x25a   : > { %v1341_v2 = vunpack.c.l.b16 %v1334_v32  ;;  %vm2925_vm9 = vmmov %vm2924_vm8 }
 0x25b   : > { %v1343_v44 = vpack.c.b16 %v1340_v16, %v1340_v16  ;;  %v1342_v40 = vpack.c.b16 %v1339_v3, %v1339_v3  ;;  %vm2927_vm4 = vmmov %vm2919_vm0 }
 0x25c   : > { %v1344_v51 = vpack.c.b16 %v1341_v2, %v1341_v2  ;;  %vm2928_vm5 = vmmov %vm2919_vm0 }
 0x25d   : > { %1205 = vrot.lane.b32.xlu0 %v1201_v29, %s2023_s29  ;;  %v2566_v37 = vld.sshfl [vmem:[#allocation1] sm:$0xff pattern:$0x75316420]  ;;  %v2568_v39 = vld.sshfl [vmem:[#allocation1 + $0x8] sm:$0xff pattern:$0x75316420] }
 0x25e   : > { %1207 = vrot.lane.b32.xlu1 %v1202_v31, %s2023_s29  ;;  %v1447_v43 = vld.sshfl [vmem:[#allocation1 + $0x10] sm:$0xff pattern:$0x75316420]  ;;  %1442 = vst [vmem:[#allocation1] ss:$2 sm:$0xff] %v2525_v38  ;;  %v1397_v2 = vpack.c.bf16 %v2566_v37, %v2566_v37 }
 0x25f   : > { %1516 = vst [vmem:[#allocation1 + $0x10] ss:$2 sm:$0xff] %v1511_v35  ;;  %v1452_v58 = vpack.c.bf16 %v1447_v43, %v1447_v43  ;;  %v1864_v37 = vld [vmem:[%s2752_s4 + $0x4] sm:$0x3] }
 0x260   : > { %1203 = vrot.lane.b32.xlu2 %v1200_v21, %s2023_s29 }
 0x261   : > { %v1454_v61 = vsel %vm2903_vm7, %v1452_v58, 0  ;;  %vm2920_vm7 = vcmask 31744  }
 0x262   : > { %v1461_v18 = vunpack.c.l.b16 %v1454_v61 }
 0x264   : > { %v1464_v6 = vpack.c.b16 %v1461_v18, %v1461_v18 }
 0x265   : > { %v1445_v53 = vld.sshfl [vmem:[#allocation1] sm:$0xff pattern:$0x75316420]  ;;  %v1446_v54 = vld.sshfl [vmem:[#allocation1 + $0x8] sm:$0xff pattern:$0x75316420]  ;;  %1347 = vrot.lane.b32.xlu0 %v1343_v44, %s2021_s22  ;;  %v1398_v44 = vpack.c.bf16 %v2568_v39, %v2568_v39 }
 0x266   : > { %1349 = vrot.lane.b32.xlu1 %v1344_v51, %s2021_s22  ;;  %1514 = vst [vmem:[#allocation1] ss:$2 sm:$0xff] %v2525_v38  ;;  %v1519_v57 = vld.sshfl [vmem:[#allocation1 + $0x10] sm:$0xff pattern:$0x75316420]  ;;  %v1451_v55 = vpack.c.bf16 %v1446_v54, %v1445_v53 }
 0x267   : > { %v1524_v36 = vpack.c.bf16 %v1519_v57, %v1519_v57  ;;  %1588 = vst [vmem:[#allocation1 + $0x10] ss:$2 sm:$0xff] %v1583_v52  ;;  %v1405_v57 = vsel %vm2928_vm5, %v1397_v2, 0 }
 0x268   : > { %1345 = vrot.lane.b32.xlu2 %v1342_v40, %s2021_s22  ;;  %v1453_v8 = vsel %vm2909_vm11, %v1451_v55, 0  ;;  %vm2926_vm11 = vmmov %vm2919_vm0 }
 0x269   : > { %v1526_v9 = vsel %vm2900_vm2, %v1524_v36, 0  ;;  %v1460_v14 = vunpack.c.h.b16 %v1453_v8  ;;  %v1459_v24 = vunpack.c.l.b16 %v1453_v8  ;;  %vm2916_vm2 = vmpackc.low %vm2914_vm14, %vm2915_vm10  ;;  %vm2931_vm10 = vcmask 138240  }
 0x26a   : > { %v1533_v59 = vunpack.c.l.b16 %v1526_v9  ;;  %vm2930_vm14 = vmmov %vm2920_vm7 }
 0x26b   : > { %v1463_v20 = vpack.c.b16 %v1460_v14, %v1460_v14  ;;  %v1462_v19 = vpack.c.b16 %v1459_v24, %v1459_v24  ;;  %v1876_v24 = vld [vmem:[%s2752_s4 + $0xc] sm:$0x3] }
 0x26c   : > { %v1536_v60 = vpack.c.b16 %v1533_v59, %v1533_v59 }
 0x26d   : > { %v1517_v63 = vld.sshfl [vmem:[#allocation1] sm:$0xff pattern:$0x75316420]  ;;  %v1518_v0 = vld.sshfl [vmem:[#allocation1 + $0x8] sm:$0xff pattern:$0x75316420] }
 0x26e   : > { %v1591_v1 = vld.sshfl [vmem:[#allocation1 + $0x10] sm:$0xff pattern:$0x75316420]  ;;  %1541 = vrot.lane.b32.xlu1 %v1536_v60, %s2020_s21  ;;  %v1523_v4 = vpack.c.bf16 %v1518_v0, %v1517_v63  ;;  %1586 = vst [vmem:[#allocation1] ss:$2 sm:$0xff] %v2525_v38 }
 0x26f   : > { %1654 = vst [vmem:[#allocation1 + $0x10] ss:$2 sm:$0xff] %v1649_v62  ;;  %v1597_v47 = vpack.c.bf16 %v1591_v1, %v1591_v1  ;;  %v1130_v63 = vld [vmem:[%s2752_s4] sm:$0x3] }
 0x270   : > { %v1525_v56 = vsel %vm2906_vm12, %v1523_v4, 0  ;;  %vm2923_vm12 = vmmov %vm2920_vm7 }
 0x271   : > { %v1532_v22 = vunpack.c.h.b16 %v1525_v56  ;;  %v1531_v5 = vunpack.c.l.b16 %v1525_v56 }
 0x273   : > { %v1535_v41 = vpack.c.b16 %v1532_v22, %v1532_v22  ;;  %v1534_v42 = vpack.c.b16 %v1531_v5, %v1531_v5  ;;  %v1870_v5 = vld [vmem:[%s2752_s4 + $0x8] sm:$0x3] }
 0x275   : > { %v1589_v10 = vld.sshfl [vmem:[#allocation1] sm:$0xff pattern:$0x75316420]  ;;  %v1590_v11 = vld.sshfl [vmem:[#allocation1 + $0x8] sm:$0xff pattern:$0x75316420]  ;;  %1539 = vrot.lane.b32.xlu0 %v1535_v41, %s2020_s21  ;;  %1537 = vrot.lane.b32.xlu2 %v1534_v42, %s2020_s21 }
 0x276   : > { %1469 = vrot.lane.b32.xlu1 %v1464_v6, %s2018_s19  ;;  %1652 = vst [vmem:[#allocation1] ss:$2 sm:$0xff] %v2525_v38  ;;  %v1657_v12 = vld.sshfl [vmem:[#allocation1 + $0x10] sm:$0xff pattern:$0x75316420]  ;;  %v1596_v28 = vpack.c.bf16 %v1590_v11, %v1590_v11  ;;  %v1595_v49 = vpack.c.bf16 %v1589_v10, %v1589_v10  ;;  %s271_s21 = scalar_lea.vmem [#allocation3], %s1830_s17 }
 0x277   : > { %v1662_v13 = vpack.c.bf16 %v1657_v12, %v1657_v12  ;;  %v1867_v6 = vld [vmem:[%s2752_s4 + $0x6] sm:$0x3]  ;;  %s1764_s28 = sshll.u32 %s271_s21, 4  ;;  %s1765_s28 = int_to_ptr.vmem [resolvable:$true] %s1764_s28 }
 0x279   : > { %v1664_v45 = vsel %vm2912_vm3, %v1662_v13, 0  ;;  %vm2929_vm3 = vmmov %vm2919_vm0 }
 0x27a   : > { %v1671_v46 = vunpack.c.l.b16 %v1664_v45  ;;  %v1408_v39 = vsel %vm2929_vm3, %v1398_v44, 0 }
 0x27c   : > { %v1674_v25 = vpack.c.b16 %v1671_v46, %v1671_v46 }
 0x27d   : > { %1467 = vrot.lane.b32.xlu0 %v1463_v20, %s2018_s19  ;;  %1465 = vrot.lane.b32.xlu2 %v1462_v19, %s2018_s19  ;;  %v1655_v15 = vld.sshfl [vmem:[#allocation1] sm:$0xff pattern:$0x75316420]  ;;  %v1656_v38 = vld.sshfl [vmem:[#allocation1 + $0x8] sm:$0xff pattern:$0x75316420] }
 0x27e   : > { %1679 = vrot.lane.b32.xlu1 %v1674_v25, %s2913_s20  ;;  %v1661_v17 = vpack.c.bf16 %v1656_v38, %v1655_v15  ;;  %1737 = vst [vmem:[#allocation1] ss:$2 sm:$0xff] %v2120_v7  ;;  %s2917_s19 = smov 112   ;;  %v1728_v7 = vld [vmem:[%s2754_s6] sm:$0xf] }
 0x27f   : > { %v1873_v38 = vld [vmem:[%s2752_s4 + $0xa] sm:$0x3] }
 0x280   : > { %v1663_v30 = vsel %vm2916_vm2, %v1661_v17, 0  ;;  %vm2932_vm2 = vmmov %vm2931_vm10 }
 0x281   : > { %v1670_v33 = vunpack.c.h.b16 %v1663_v30  ;;  %v1669_v23 = vunpack.c.l.b16 %v1663_v30 }
 0x283   : > { %v1673_v48 = vpack.c.b16 %v1670_v33, %v1670_v33  ;;  %v1672_v50 = vpack.c.b16 %v1669_v23, %v1669_v23 }
 0x285   : > { %1677 = vrot.lane.b32.xlu0 %v1673_v48, %s2913_s20  ;;  %1675 = vrot.lane.b32.xlu2 %v1672_v50, %s2913_s20 }
 0x286   : > { %1607 = vrot.lane.b32.xlu1 %v1597_v47, %s2917_s19 }
 0x28d   : > { %1605 = vrot.lane.b32.xlu0 %v1596_v28, %s2917_s19  ;;  %1603 = vrot.lane.b32.xlu2 %v1595_v49, %s2917_s19  ;;  %s1762_s19 = scalar_lea.hbm %s2755_s7, %s1891_s18 }
 0x28e   : > { %1731 = vperm.xlu1 %1942, %v1728_v7   ;;  %v1882_v7 = vld [vmem:[%s2752_s4 + $0x10] sm:$0x3]  ;;  %s1766_s22 = sshll.u32 %s1762_s19, 4  ;;  %s1767_s22 = int_to_ptr.hbm [resolvable:$true] %s1766_s22 }
 0x28f   : > { %s1965_s29 = sshra.s32 %s1767_s22, 4  ;;  %s1966_s29 = int_to_ptr.hbm [resolvable:$true] %s1965_s29 }
 0x290   : > { %s1967_s9 = scalar_lea.hbm %s1966_s29, 8  ;;  %p1972_p0 = scmp.lt.s32.totalorder %s1966_s29, %s2755_s7 }
 0x291   : > { %p1968_p11 = scmp.ne.s32.totalorder %s1966_s29, %s1967_s9  ;;  %p1973_p1 = scmp.lt.s32.totalorder %s1971_s15, %s1967_s9 }
 0x293   : > { %p1969_p12 = pnand %p1968_p11, %p2103_p5  ;;  %p1974_p2 = por %p1973_p1, %p1972_p0 }
 0x295   : > { %1723 = vperm.xlu0 %1941, %v1720_v27   ;;  %p1970_p13 = pneg %p1969_p12 }
 0x297   : > { %p1975_p3 = pnand %p1974_p2, %p1970_p13 }
 0x2a2   : > { %v1155_v26 = vpop.permute.xlu2 %1154 }
 0x2aa   : > { %v1153_v29 = vpop.permute.xlu2 %1152 }
 0x2ab   : > { %v1158_v31 = vsel %vm2918_vm1, %v1153_v29, %v1155_v26  ;;  %vm2933_vm1 = vmmov %vm2919_vm0 }
 0x2ac   : > { %v1164_v32 = vsel %vm2919_vm0, %v1158_v31, 0  ;;  %vm2934_vm0 = vmmov %vm2920_vm7 }
 0x2ad   : > { %1176 = vmatpush.bf16.msra.mxu2 %v1164_v32  ;;  %vm2943_vm5 = vmmov %vm2934_vm0 }
 0x2ae   : > { %vm2944_vm3 = vmmov %vm2934_vm0 }
 0x2b0   : > { %1860 = vmatmul.msk.bf16.vlgmr.msra.gmra.mxu2 %vm2920_vm7, %v1859_v34  ;;  %vm2935_vm7 = vmmov %vm2933_vm1 }
 0x2b2   : > { %v1274_v16 = vpop.permute.xlu2 %1273 }
 0x2ba   : > { %v1204_v36 = vpop.permute.xlu2 %1203 }
 0x2bb   : > { %v1157_v35 = vpop.permute.xlu1 %1156 }
 0x2bc   : > { %v1159_v21 = vsel %vm2921_vm15, %v1155_v26, %v1157_v35  ;;  %vm2936_vm15 = vmmov %vm2934_vm0 }
 0x2bd   : > { %v1167_v43 = vsel %vm2922_vm6, %v1159_v21, 0  ;;  %vm2937_vm6 = vmmov %vm2934_vm0 }
 0x2be   : > { %1189 = vmatpush.bf16.msra.mxu3 %v1167_v43 }
 0x2c1   : > { %1861 = vmatmul.msk.bf16.vlgmr.msra.gmra.mxu3 %vm2923_vm12, %v1859_v34  ;;  %vm2938_vm12 = vcmask 7168   ;;  %v1879_v34 = vld [vmem:[%s2752_s4 + $0xe] sm:$0x3] }
 0x2c2   : > { %v1346_v0 = vpop.permute.xlu2 %1345 }
 0x2c7   : > { %v1276_v3 = vpop.permute.xlu0 %1275 }
 0x2c8   : > { %v1278_v51 = vpop.permute.xlu1 %1277  ;;  %v1279_v52 = vsel %vm2924_vm8, %v1274_v16, %v1276_v3  ;;  %vm2939_vm8 = vmmov %vm2938_vm12 }
 0x2c9   : > { %v1280_v53 = vsel %vm2925_vm9, %v1276_v3, %v1278_v51  ;;  %v1285_v54 = vsel %vm2926_vm11, %v1279_v52, 0  ;;  %vm2940_vm9 = vmmov %vm2933_vm1 }
 0x2ca   : > { %v1288_v40 = vsel %vm2927_vm4, %v1280_v53, 0  ;;  %1297 = vmatpush.bf16.msrb.mxu2 %v1285_v54  ;;  %vm2941_vm11 = vmmov %vm2933_vm1 }
 0x2cb   : > { %1310 = vmatpush.bf16.msrb.mxu3 %v1288_v40  ;;  %vm2942_vm4 = vmmov %vm2934_vm0 }
 0x2cd   : > { %1865 = vmatmul.msk.bf16.vlgmr.msrb.gmra.mxu2 %vm2930_vm14, %v1864_v37  ;;  %vm2945_vm14 = vmmov %vm2934_vm0 }
 0x2ce   : > { %1417 = vmatpush.bf16.msra.mxu2 %v1405_v57 }
 0x2cf   : > { %1430 = vmatpush.bf16.msra.mxu3 %v1408_v39  ;;  %v1206_v58 = vpop.permute.xlu0 %1205  ;;  %v1538_v41 = vpop.permute.xlu2 %1537 }
 0x2d0   : > { %v1208_v9 = vpop.permute.xlu1 %1207  ;;  %v1209_v59 = vsel %vm2931_vm10, %v1204_v36, %v1206_v58  ;;  %vm2946_vm10 = vcmask 924672  }
 0x2d1   : > { %v1210_v60 = vsel %vm2932_vm2, %v1206_v58, %v1208_v9  ;;  %v1215_v61 = vsel %vm2933_vm1, %v1209_v59, 0  ;;  %1866 = vmatmul.msk.bf16.vlgmr.msrb.gmra.mxu3 %vm2934_vm0, %v1864_v37  ;;  %vm2947_vm2 = vmmov %vm2946_vm10 }
 0x2d2   : > { %v1218_v62 = vsel %vm2935_vm7, %v1210_v60, 0  ;;  %1227 = vmatpush.bf16.msrb.mxu0 %v1215_v61  ;;  %vm2948_vm0 = vmmov %vm2933_vm1 }
 0x2d3   : > { %1240 = vmatpush.bf16.msrb.mxu1 %v1218_v62  ;;  %vm2949_vm7 = vmmov %vm2944_vm3 }
 0x2d5   : > { %1862 = vmatmul.msk.bf16.vlgmr.msrb.gmra.mxu0 %vm2936_vm15, %v1130_v63  ;;  %vm2950_vm15 = vcmask 1039360  }
 0x2d6   : > { %1863 = vmatmul.msk.bf16.vlgmr.msrb.gmra.mxu1 %vm2937_vm6, %v1130_v63  ;;  %vm2951_vm6 = vmmov %vm2950_vm15 }
 0x2d7   : > { %v1348_v1 = vpop.permute.xlu0 %1347  ;;  %v1466_v14 = vpop.permute.xlu2 %1465 }
 0x2d8   : > { %v1350_v4 = vpop.permute.xlu1 %1349  ;;  %v1351_v18 = vsel %vm2938_vm12, %v1346_v0, %v1348_v1  ;;  %vm2952_vm12 = vmmov %vm2948_vm0 }
 0x2d9   : > { %v1352_v56 = vsel %vm2939_vm8, %v1348_v1, %v1350_v4  ;;  %v1357_v55 = vsel %vm2940_vm9, %v1351_v18, 0  ;;  %vm2953_vm8 = vmmov %vm2948_vm0 }
 0x2da   : > { %v1360_v22 = vsel %vm2941_vm11, %v1352_v56, 0  ;;  %1369 = vmatpush.bf16.msra.mxu0 %v1357_v55  ;;  %vm2954_vm9 = vmmov %vm2944_vm3 }
 0x2db   : > { %1382 = vmatpush.bf16.msra.mxu1 %v1360_v22  ;;  %vm2955_vm11 = vmmov %vm2944_vm3 }
 0x2dd   : > { %1871 = vmatmul.msk.bf16.vlgmr.msra.gmra.mxu2 %vm2942_vm4, %v1870_v5  ;;  %vm2956_vm4 = vmmov %vm2944_vm3 }
 0x2df   : > { %v1676_v17 = vpop.permute.xlu2 %1675 }
 0x2e0   : > { %v1542_v42 = vpop.permute.xlu1 %1541 }
 0x2e1   : > { %1872 = vmatmul.msk.bf16.vlgmr.msra.gmra.mxu3 %vm2943_vm5, %v1870_v5  ;;  %vm2957_vm5 = vcmask 908288  }
 0x2e5   : > { %1868 = vmatmul.msk.bf16.vlgmr.msra.gmra.mxu0 %vm2944_vm3, %v1867_v6  ;;  %vm2958_vm3 = vmmov %vm2957_vm5 }
 0x2e6   : > { %1869 = vmatmul.msk.bf16.vlgmr.msra.gmra.mxu1 %vm2945_vm14, %v1867_v6  ;;  %vm2959_vm14 = vmmov %vm2948_vm0 }
 0x2e7   : > { %v1540_v8 = vpop.permute.xlu0 %1539  ;;  %v1604_v28 = vpop.permute.xlu2 %1603 }
 0x2e8   : > { %v1543_v10 = vsel %vm2946_vm10, %v1538_v41, %v1540_v8  ;;  %v1544_v11 = vsel %vm2947_vm2, %v1540_v8, %v1542_v42  ;;  %v1470_v45 = vpop.permute.xlu1 %1469  ;;  %vm2960_vm10 = vmmov %vm2948_vm0 }
 0x2e9   : > { %v1549_v12 = vsel %vm2933_vm1, %v1543_v10, 0  ;;  %v1552_v13 = vsel %vm2948_vm0, %v1544_v11, 0  ;;  %vm2961_vm2 = vmmov %vm2956_vm4  ;;  %vm2962_vm1 = vcmask 916480  }
 0x2ea   : > { %1561 = vmatpush.bf16.msrb.mxu2 %v1549_v12  ;;  %1574 = vmatpush.bf16.msrb.mxu3 %v1552_v13  ;;  %vm2963_vm0 = vmmov %vm2962_vm1 }
 0x2ed   : > { %1877 = vmatmul.msk.bf16.vlgmr.msrb.gmra.mxu2 %vm2949_vm7, %v1876_v24  ;;  %vm2964_vm7 = vmmov %vm2953_vm8 }
 0x2ef   : > { %v1468_v46 = vpop.permute.xlu0 %1467 }
 0x2f0   : > { %v1471_v20 = vsel %vm2950_vm15, %v1466_v14, %v1468_v46  ;;  %v1472_v19 = vsel %vm2951_vm6, %v1468_v46, %v1470_v45  ;;  %v1680_v30 = vpop.permute.xlu1 %1679  ;;  %vm2965_vm15 = vmmov %vm2964_vm7 }
 0x2f1   : > { %v1477_v25 = vsel %vm2952_vm12, %v1471_v20, 0  ;;  %v1480_v15 = vsel %vm2953_vm8, %v1472_v19, 0  ;;  %1878 = vmatmul.msk.bf16.vlgmr.msrb.gmra.mxu3 %vm2954_vm9, %v1876_v24  ;;  %vm2966_vm6 = vmmov %vm2961_vm2 }
 0x2f2   : > { %1489 = vmatpush.bf16.msrb.mxu0 %v1477_v25  ;;  %1502 = vmatpush.bf16.msrb.mxu1 %v1480_v15  ;;  %vm2967_vm12 = vmmov %vm2961_vm2 }
 0x2f3   : > { %vm2968_vm8 = vmmov %vm2961_vm2 }
 0x2f5   : > { %1874 = vmatmul.msk.bf16.vlgmr.msrb.gmra.mxu0 %vm2955_vm11, %v1873_v38 }
 0x2f6   : > { %1875 = vmatmul.msk.bf16.vlgmr.msrb.gmra.mxu1 %vm2956_vm4, %v1873_v38 }
 0x2f7   : > { %v1678_v33 = vpop.permute.xlu0 %1677 }
 0x2f8   : > { %v1681_v23 = vsel %vm2957_vm5, %v1676_v17, %v1678_v33  ;;  %v1682_v47 = vsel %vm2958_vm3, %v1678_v33, %v1680_v30  ;;  %v1608_v49 = vpop.permute.xlu1 %1607 }
 0x2f9   : > { %v1687_v48 = vsel %vm2959_vm14, %v1681_v23, 0  ;;  %v1690_v50 = vsel %vm2960_vm10, %v1682_v47, 0 }
 0x2fa   : > { %1699 = vmatpush.bf16.msra.mxu2 %v1687_v48  ;;  %1712 = vmatpush.bf16.msra.mxu3 %v1690_v50  ;;  %v1739_v48 = vld.sshfl [vmem:[#allocation1 + $0x8] sm:$0xff pattern:$0x75316420] }
 0x2fd   : > { %1883 = vmatmul.msk.bf16.vlgmr.msra.gmra.mxu2 %vm2961_vm2, %v1882_v7 }
 0x2ff   : > { %v1606_v27 = vpop.permute.xlu0 %1605 }
 0x300   : > { %v1609_v26 = vsel %vm2962_vm1, %v1604_v28, %v1606_v27  ;;  %v1610_v29 = vsel %vm2963_vm0, %v1606_v27, %v1608_v49  ;;  %v1732_v47 = vpop.permute.xlu1 %1731  ;;  %v1738_v49 = vld.sshfl [vmem:[#allocation1] sm:$0xff pattern:$0x75316420] }
 0x301   : > { %v1615_v31 = vsel %vm2964_vm7, %v1609_v26, 0  ;;  %v1618_v32 = vsel %vm2965_vm15, %v1610_v29, 0  ;;  %1884 = vmatmul.msk.bf16.vlgmr.msra.gmra.mxu3 %vm2966_vm6, %v1882_v7 }
 0x302   : > { %1627 = vmatpush.bf16.msra.mxu0 %v1615_v31  ;;  %1640 = vmatpush.bf16.msra.mxu1 %v1618_v32 }
 0x305   : > { %1880 = vmatmul.msk.bf16.vlgmr.msra.gmra.mxu0 %vm2967_vm12, %v1879_v34 }
 0x306   : > { %1881 = vmatmul.msk.bf16.vlgmr.msra.gmra.mxu1 %vm2968_vm8, %v1879_v34 }
 0x307   : > { %v1724_v38 = vpop.permute.xlu0 %1723 }
 0x333   : > { %v1178_v35 = vpop.f32.mrf.mxu2 }
 0x33b   : > { %v1180_v21 = vpop.f32.mrf.mxu2 }
 0x344   : > { %v1191_v43 = vpop.f32.mrf.mxu3 }
 0x34c   : > { %v1193_v16 = vpop.f32.mrf.mxu3 }
 0x350   : > { %v1299_v2 = vpop.f32.mrf.mxu2 }
 0x352   : > { %v1229_v3 = vpop.f32.mrf.mxu0 }
 0x353   : > { %v1242_v44 = vpop.f32.mrf.mxu1  ;;  %v1230_v62 = vadd.f32 %v1229_v3, %v1178_v35 }
 0x354   : > { %v1312_v51 = vpop.f32.mrf.mxu3  ;;  %v1243_v63 = vadd.f32 %v1242_v44, %v1191_v43 }
 0x355   : > { %v1316_v18 = vadd.f32 %v1299_v2, %v1230_v62 }
 0x356   : > { %v1317_v56 = vadd.f32 %v1312_v51, %v1243_v63 }
 0x358   : > { %v1301_v52 = vpop.f32.mrf.mxu2 }
 0x35a   : > { %v1231_v53 = vpop.f32.mrf.mxu0 }
 0x35b   : > { %v1244_v54 = vpop.f32.mrf.mxu1 }
 0x35c   : > { %v1314_v40 = vpop.f32.mrf.mxu3 }
 0x360   : > { %v1419_v57 = vpop.f32.mrf.mxu2 }
 0x362   : > { %v1371_v37 = vpop.f32.mrf.mxu0 }
 0x363   : > { %v1384_v39 = vpop.f32.mrf.mxu1  ;;  %v1388_v55 = vadd.f32 %v1371_v37, %v1316_v18 }
 0x364   : > { %v1432_v36 = vpop.f32.mrf.mxu3  ;;  %v1389_v22 = vadd.f32 %v1384_v39, %v1317_v56 }
 0x365   : > { %v1436_v42 = vadd.f32 %v1419_v57, %v1388_v55 }
 0x366   : > { %v1437_v8 = vadd.f32 %v1432_v36, %v1389_v22 }
 0x368   : > { %v1421_v58 = vpop.f32.mrf.mxu2 }
 0x36a   : > { %v1373_v9 = vpop.f32.mrf.mxu0 }
 0x36b   : > { %v1386_v59 = vpop.f32.mrf.mxu1 }
 0x36c   : > { %v1434_v60 = vpop.f32.mrf.mxu3 }
 0x370   : > { %v1563_v61 = vpop.f32.mrf.mxu2 }
 0x372   : > { %v1491_v0 = vpop.f32.mrf.mxu0 }
 0x373   : > { %v1504_v1 = vpop.f32.mrf.mxu1  ;;  %v1508_v11 = vadd.f32 %v1491_v0, %v1436_v42 }
 0x374   : > { %v1576_v4 = vpop.f32.mrf.mxu3  ;;  %v1509_v12 = vadd.f32 %v1504_v1, %v1437_v8 }
 0x375   : > { %v1580_v14 = vadd.f32 %v1563_v61, %v1508_v11 }
 0x376   : > { %v1581_v24 = vadd.f32 %v1576_v4, %v1509_v12 }
 0x378   : > { %v1565_v5 = vpop.f32.mrf.mxu2 }
 0x37a   : > { %v1493_v41 = vpop.f32.mrf.mxu0 }
 0x37b   : > { %v1506_v6 = vpop.f32.mrf.mxu1 }
 0x37c   : > { %v1578_v10 = vpop.f32.mrf.mxu3 }
 0x380   : > { %v1701_v13 = vpop.f32.mrf.mxu2 }
 0x382   : > { %v1629_v45 = vpop.f32.mrf.mxu0 }
 0x383   : > { %v1646_v46 = vadd.f32 %v1629_v45, %v1580_v14  ;;  %v1642_v20 = vpop.f32.mrf.mxu1 }
 0x384   : > { %v1647_v19 = vadd.f32 %v1642_v20, %v1581_v24  ;;  %v1714_v25 = vpop.f32.mrf.mxu3 }
 0x385   : > { %v1718_v15 = vadd.f32 %v1701_v13, %v1646_v46 }
 0x386   : > { %v1719_v17 = vadd.f32 %v1714_v25, %v1647_v19 }
 0x387   : > { %v1726_v30 = vmul.f32 %v1724_v38, %v1718_v15 }
 0x388   : > { %v1727_v33 = vmul.f32 %v1724_v38, %v1719_v17  ;;  %v1703_v23 = vpop.f32.mrf.mxu2 }
 0x389   : > { %v1734_v50 = vadd.f32 %v1732_v47, %v1726_v30 }
 0x38a   : > { %v1735_v7 = vadd.f32 %v1732_v47, %v1727_v33  ;;  %v1631_v28 = vpop.f32.mrf.mxu0 }
 0x38b   : > { %v1644_v27 = vpop.f32.mrf.mxu1  ;;  %v1742_v31 = vadd.f32 %v1738_v49, %v1734_v50 }
 0x38c   : > { %v1743_v26 = vadd.f32 %v1739_v48, %v1735_v7  ;;  %v1716_v29 = vpop.f32.mrf.mxu3 }
 0x38e   : > { %v1746_v32 = vrot.slane %v1743_v26, 4 }
 0x390   : > { %v1747_v34 = vsel %vm1109_vm13, %v1742_v31, %v1746_v32 }
 0x391   : > { %1749 = vst [vmem:[%s271_s21] sm:$0xff] %v1747_v34 }
 0x392   : > { %1978 = shalt.err (!%p1975_p3)
}
 0x393   : > { %1892 = dma.vmem_to_hbm [thread:$0]  (%p2103_p5), %s1765_s28, 128, %s1767_s22, %s1751_s23  }
 0x394 PF: > { %p1898_p4 = scmp.ge.s32.totalorder %s2013_s27, 2  ;;  %s1778_s16 = sand.u32 1, %s2001_s24  }
 0x395   : > { %s1779_s8 = scalar_lea.sflag [#allocation4], %s1778_s16 }
 0x396   : > { %p1895_p7 = pnand %p1898_p4, %p2107_p6 }
 0x398   : > { %p1896_p8 = pneg %p1895_p7 }
 0x39a   : > { %1996 = dma.done.wait (%p1896_p8), %s1779_s8, 128  }
 0x39b   : > { %1998 = vsyncadd (%p1896_p8), %s1779_s8, 4294967168  ;;  %p17_p9 = scmp.ge.s32.totalorder %s2090_s30, 4   ;;  %s2969_s24 = smov %s2005_s25 }
 0x39c   : > { %s2970_s25 = smov %s2009_s26  ;;  %s2971_s26 = smov %s2101_s10 }
 0x39d   : > { %s2972_s27 = smov %s2090_s30  ;;  %19 = sbr.rel (!%p17_p9) target bundleno = 3 (0x3), region = 115 }
 0x3a2   :  { %1785 = vsyncpa [#allocation4], 1 }
 0x3a3   :  { %1787 = vsyncpa [#allocation4 + $0x1], 1 }

</bundles_post_ra>
